<compile_context>
chip_gen: v6e
topology: v6e:2x2x1
jax: 0.10.0
libtpu: 0.0.40
codegen_flags: <defaults>
</compile_context>

<pallas_src>
import functools
import numpy as np
import jax
import jax.numpy as jnp
from jax.experimental import pallas as pl
from jax.experimental.pallas import tpu as pltpu


def _sigmoid(x):
    return 1.0 / (1.0 + jnp.exp(-x))


# -----------------------------------------------------------------------------
# Encoder kernel: (patches @ Wc) + bias -> ReLU -> GAP (MXU) -> fc -> ReLU ->
# Dropout(0.5).  Grid = (B, n_row_blocks); GAP partial sums accumulated in a
# VMEM scratch, epilogue under pl.when(last block).
# -----------------------------------------------------------------------------
def encoder_kernel(patch_ref, wc_ref, bc_ref, wfc_ref, bfc_ref, rnd_ref,
                   feats_ref, out_ref, acc_ref, *, inv_hw):
    j = pl.program_id(1)
    nj = pl.num_programs(1)

    @pl.when(j == 0)
    def _init():
        acc_ref[...] = jnp.zeros_like(acc_ref)

    # Single MXU matmul, contraction = 9*Cin (im2col-lite), bf16 in / f32 accum.
    p = patch_ref[0].astype(jnp.bfloat16)                      # (TM, 9*Cin)
    w = wc_ref[...].astype(jnp.bfloat16)                       # (9*Cin, Cout)
    h = jnp.dot(p, w, preferred_element_type=jnp.float32) + bc_ref[...]
    h = jnp.maximum(h, 0.0)                                    # backbone ReLU

    # Global-average-pool partial sum as an MXU contraction (scaled ones row).
    tm = h.shape[0]
    ones_row = jnp.full((1, tm), inv_hw, jnp.float32)
    acc_ref[...] += jnp.dot(ones_row, h, preferred_element_type=jnp.float32)

    @pl.when(j == nj - 1)
    def _finalize():
        feats = acc_ref[...]                                   # (1, Cout) pooled
        feats_ref[0] = feats
        logits = jnp.dot(feats.astype(jnp.bfloat16),
                         wfc_ref[...].astype(jnp.bfloat16),
                         preferred_element_type=jnp.float32) + bfc_ref[...]
        act = jnp.maximum(logits, 0.0)                         # self.relu
        keep = rnd_ref[0] < 0.5                                # Dropout(0.5), train
        out_ref[0] = jnp.where(keep, act * 2.0, 0.0)


# -----------------------------------------------------------------------------
# Decoder kernel: per time step t (grid over T+1 steps, sequential):
#   x_0 = encoder features; x_t = Dropout(Embed(captions[t-1]))  (t >= 1)
#   multi-layer LSTM with (h, c) in VMEM scratch; Linear(hidden -> vocab).
# -----------------------------------------------------------------------------
def make_decoder_kernel(num_layers, hidden_size):
    Hd = hidden_size

    def kernel(*refs):
        feat_ref, oh_ref, rnd_ref, emb_ref = refs[:4]
        lstm_refs = refs[4:4 + 3 * num_layers]
        wlin_ref = refs[4 + 3 * num_layers]
        blin_ref = refs[5 + 3 * num_layers]
        out_ref = refs[6 + 3 * num_layers]
        h_scr = refs[7 + 3 * num_layers]
        c_scr = refs[8 + 3 * num_layers]

        t = pl.program_id(0)

        @pl.when(t == 0)
        def _init():
            h_scr[...] = jnp.zeros_like(h_scr)
            c_scr[...] = jnp.zeros_like(c_scr)

        # Embedding lookup as a one-hot MXU matmul, then Dropout(0.5).
        emb = jnp.dot(oh_ref[0].astype(jnp.bfloat16),
                      emb_ref[...].astype(jnp.bfloat16),
                      preferred_element_type=jnp.float32)       # (B, E)
        keep = rnd_ref[0] < 0.5
        emb = jnp.where(keep, emb * 2.0, 0.0)

        # t == 0 -> encoder features (already dropped out in the encoder).
        is_img = (t == 0).astype(jnp.float32)
        x = is_img * feat_ref[...] + (1.0 - is_img) * emb       # (B, E)

        for l in range(num_layers):
            wih = lstm_refs[3 * l][...].astype(jnp.bfloat16)    # (in, 4H)
            whh = lstm_refs[3 * l + 1][...].astype(jnp.bfloat16)
            bias_l = lstm_refs[3 * l + 2][...]                  # (1, 4H)
            h_prev = h_scr[l]
            c_prev = c_scr[l]
            gates = (jnp.dot(x.astype(jnp.bfloat16), wih,
                             preferred_element_type=jnp.float32)
                     + jnp.dot(h_prev.astype(jnp.bfloat16), whh,
                               preferred_element_type=jnp.float32)
                     + bias_l)                                  # (B, 4H)
            i_g = _sigmoid(gates[:, 0 * Hd:1 * Hd])
            f_g = _sigmoid(gates[:, 1 * Hd:2 * Hd])
            g_g = jnp.tanh(gates[:, 2 * Hd:3 * Hd])
            o_g = _sigmoid(gates[:, 3 * Hd:4 * Hd])
            c_new = f_g * c_prev + i_g * g_g
            h_new = o_g * jnp.tanh(c_new)
            c_scr[l] = c_new
            h_scr[l] = h_new
            x = h_new

        logits = jnp.dot(x.astype(jnp.bfloat16),
                         wlin_ref[...].astype(jnp.bfloat16),
                         preferred_element_type=jnp.float32) + blin_ref[...]
        out_ref[0] = logits

    return kernel


# -----------------------------------------------------------------------------
# Wrapper: full CNNtoRNN forward.
# -----------------------------------------------------------------------------
@jax.jit
def cnn_to_rnn_forward(images, captions, params, enc_rand, emb_rand):
    B, Cin, H, W = images.shape
    conv_w = params['conv_w']
    Cout = conv_w.shape[-1]
    E = params['fc_w'].shape[-1]
    V = params['embed'].shape[0]
    Hd = params['lin_w'].shape[0]
    L = len(params['lstm'])
    T = captions.shape[0]

    # ---- im2col-lite patch gather (one fused XLA producer pass) -------------
    x = jnp.transpose(images, (0, 2, 3, 1)).astype(jnp.float32)   # NCHW -> NHWC
    xp = jnp.pad(x, ((0, 0), (1, 1), (1, 1), (0, 0)))
    taps = [xp[:, kh:kh + H, kw:kw + W, :]
            for kh in range(3) for kw in range(3)]
    patches = jnp.concatenate(taps, axis=-1).reshape(B, H * W, 9 * Cin)

    wc = conv_w.reshape(9 * Cin, Cout)
    bc = params['conv_b']                                         # (1, Cout)
    wfc = params['fc_w']                                          # (Cout, E)
    bfc = params['fc_b']                                          # (1, E)
    enc_rand3 = enc_rand.reshape(B, 1, E)

    TM = 128
    assert (H * W) % TM == 0
    nj = (H * W) // TM

    feats3, enc3 = pl.pallas_call(
        functools.partial(encoder_kernel, inv_hw=1.0 / float(H * W)),
        out_shape=(jax.ShapeDtypeStruct((B, 1, Cout), jnp.float32),
                   jax.ShapeDtypeStruct((B, 1, E), jnp.float32)),
        grid=(B, nj),
        in_specs=[
            pl.BlockSpec((1, TM, 9 * Cin), lambda b, j: (b, j, 0)),
            pl.BlockSpec((9 * Cin, Cout), lambda b, j: (0, 0)),
            pl.BlockSpec((1, Cout), lambda b, j: (0, 0)),
            pl.BlockSpec((Cout, E), lambda b, j: (0, 0)),
            pl.BlockSpec((1, E), lambda b, j: (0, 0)),
            pl.BlockSpec((1, 1, E), lambda b, j: (b, 0, 0)),
        ],
        out_specs=(
            pl.BlockSpec((1, 1, Cout), lambda b, j: (b, 0, 0)),
            pl.BlockSpec((1, 1, E), lambda b, j: (b, 0, 0)),
        ),
        scratch_shapes=[pltpu.VMEM((1, Cout), jnp.float32)],
        compiler_params=pltpu.CompilerParams(
            dimension_semantics=("parallel", "arbitrary")),
    )(patches, wc, bc, wfc, bfc, enc_rand3)
    feats = feats3[:, 0, :]        # (B, Cout) pooled backbone feature (pre-fc)
    enc_out = enc3[:, 0, :]        # (B, E)    encoder output (post fc/relu/dropout)

    # ---- decoder inputs ------------------------------------------------------
    onehot = jax.nn.one_hot(captions, V, dtype=jnp.float32)       # (T, B, V)
    onehot = jnp.concatenate(
        [jnp.zeros((1, B, V), jnp.float32), onehot], axis=0)      # row 0 unused (t=0)
    rand_p = jnp.concatenate(
        [jnp.zeros((1, B, E), jnp.float32), emb_rand], axis=0)

    lstm_flat = []
    in_specs = [
        pl.BlockSpec((B, E), lambda t: (0, 0)),                   # features
        pl.BlockSpec((1, B, V), lambda t: (t, 0, 0)),             # one-hot captions
        pl.BlockSpec((1, B, E), lambda t: (t, 0, 0)),             # dropout uniforms
        pl.BlockSpec((V, E), lambda t: (0, 0)),                   # embedding table
    ]
    for (wih, whh, bias) in params['lstm']:
        lstm_flat += [wih, whh, bias]
        in_specs += [
            pl.BlockSpec(wih.shape, lambda t: (0, 0)),
            pl.BlockSpec(whh.shape, lambda t: (0, 0)),
            pl.BlockSpec(bias.shape, lambda t: (0, 0)),
        ]
    in_specs += [
        pl.BlockSpec((Hd, V), lambda t: (0, 0)),                  # vocab projection
        pl.BlockSpec((1, V), lambda t: (0, 0)),
    ]

    logits = pl.pallas_call(
        make_decoder_kernel(L, Hd),
        out_shape=jax.ShapeDtypeStruct((T + 1, B, V), jnp.float32),
        grid=(T + 1,),
        in_specs=in_specs,
        out_specs=pl.BlockSpec((1, B, V), lambda t: (t, 0, 0)),
        scratch_shapes=[pltpu.VMEM((L, B, Hd), jnp.float32),
                        pltpu.VMEM((L, B, Hd), jnp.float32)],
        compiler_params=pltpu.CompilerParams(
            dimension_semantics=("arbitrary",)),
    )(enc_out, onehot, rand_p, params['embed'], *lstm_flat,
      params['lin_w'], params['lin_b'])

    return feats, enc_out, logits


# -----------------------------------------------------------------------------
# Pure-JAX reference (f32) using the same externally-supplied dropout randoms.
# -----------------------------------------------------------------------------
def reference_forward(images, captions, params, enc_rand, emb_rand):
    B, Cin, H, W = images.shape
    conv_w = params['conv_w']
    Cout = conv_w.shape[-1]
    x = jnp.transpose(images, (0, 2, 3, 1)).astype(jnp.float32)
    xp = jnp.pad(x, ((0, 0), (1, 1), (1, 1), (0, 0)))
    acc = jnp.zeros((B, H, W, Cout), jnp.float32)
    for kh in range(3):
        for kw in range(3):
            acc += jnp.einsum('bhwc,co->bhwo', xp[:, kh:kh + H, kw:kw + W, :],
                              conv_w[kh, kw], precision=jax.lax.Precision.HIGHEST)
    feats = jnp.mean(jnp.maximum(acc + params['conv_b'][0], 0.0), axis=(1, 2))
    act = jnp.maximum(feats @ params['fc_w'] + params['fc_b'][0], 0.0)
    enc_out = jnp.where(enc_rand < 0.5, act * 2.0, 0.0)

    emb = params['embed'][captions]                               # (T, B, E)
    emb = jnp.where(emb_rand < 0.5, emb * 2.0, 0.0)
    seq = jnp.concatenate([enc_out[None], emb], axis=0)           # (T+1, B, E)

    L = len(params['lstm'])
    Hd = params['lin_w'].shape[0]
    h = [jnp.zeros((B, Hd), jnp.float32) for _ in range(L)]
    c = [jnp.zeros((B, Hd), jnp.float32) for _ in range(L)]
    outs = []
    for t in range(seq.shape[0]):
        xt = seq[t]
        for l, (wih, whh, b) in enumerate(params['lstm']):
            gates = xt @ wih + h[l] @ whh + b[0]
            i_g = _sigmoid(gates[:, 0:Hd])
            f_g = _sigmoid(gates[:, Hd:2 * Hd])
            g_g = jnp.tanh(gates[:, 2 * Hd:3 * Hd])
            o_g = _sigmoid(gates[:, 3 * Hd:4 * Hd])
            c[l] = f_g * c[l] + i_g * g_g
            h[l] = o_g * jnp.tanh(c[l])
            xt = h[l]
        outs.append(xt @ params['lin_w'] + params['lin_b'][0])
    return feats, enc_out, jnp.stack(outs, axis=0)


if __name__ == "__main__":
    # Small shapes; feature/embed/hidden = 128 and vocab = 256 keep every output
    # lane-dense (multiple of 128) per the performance feedback.
    B, Cin, H, W = 2, 4, 16, 16
    Cout, E, Hd, V, L, T = 128, 128, 128, 256, 2, 8

    key = jax.random.PRNGKey(0)
    ks = jax.random.split(key, 16)

    images = jax.random.normal(ks[0], (B, Cin, H, W), jnp.float32)
    captions = jax.random.randint(ks[1], (T, B), 0, V, jnp.int32)

    params = {
        'conv_w': 0.1 * jax.random.normal(ks[2], (3, 3, Cin, Cout), jnp.float32),
        'conv_b': 0.01 * jax.random.normal(ks[3], (1, Cout), jnp.float32),
        'fc_w': 0.1 * jax.random.normal(ks[4], (Cout, E), jnp.float32),
        'fc_b': 0.01 * jax.random.normal(ks[5], (1, E), jnp.float32),
        'embed': 0.1 * jax.random.normal(ks[6], (V, E), jnp.float32),
        'lstm': tuple(
            (0.1 * jax.random.normal(ks[7 + 3 * l],
                                     (E if l == 0 else Hd, 4 * Hd), jnp.float32),
             0.1 * jax.random.normal(ks[8 + 3 * l], (Hd, 4 * Hd), jnp.float32),
             0.01 * jax.random.normal(ks[9 + 3 * l], (1, 4 * Hd), jnp.float32))
            for l in range(L)),
        'lin_w': 0.1 * jax.random.normal(ks[13], (Hd, V), jnp.float32),
        'lin_b': 0.01 * jax.random.normal(ks[14], (1, V), jnp.float32),
    }

    # Externally supplied dropout uniforms (train-mode Dropout(0.5)).
    enc_rand = jax.random.uniform(ks[15], (B, E), jnp.float32)
    emb_rand = jax.random.uniform(jax.random.PRNGKey(1), (T, B, E), jnp.float32)

    feats, enc_out, logits = cnn_to_rnn_forward(images, captions, params,
                                                enc_rand, emb_rand)
    logits = jax.block_until_ready(logits)
    feats = jax.block_until_ready(feats)
    enc_out = jax.block_until_ready(enc_out)

    ref_feats, ref_enc, ref_logits = reference_forward(images, captions, params,
                                                       enc_rand, emb_rand)

    np.testing.assert_allclose(np.asarray(feats), np.asarray(ref_feats),
                               atol=2e-2, rtol=2e-2)
    np.testing.assert_allclose(np.asarray(enc_out), np.asarray(ref_enc),
                               atol=2e-2, rtol=2e-2)
    np.testing.assert_allclose(np.asarray(logits), np.asarray(ref_logits),
                               atol=3e-2, rtol=3e-2)

    print("KERNEL_OK")
</pallas_src>

<mosaic_0001>
module attributes {stable_mosaic.version = 11 : i64} {
  func.func @encoder_kernel(%arg0: i32, %arg1: i32, %arg2: memref<1x128x36xf32, #tpu.memory_space<vmem>>, %arg3: memref<36x128xf32, #tpu.memory_space<vmem>>, %arg4: memref<1x128xf32, #tpu.memory_space<vmem>>, %arg5: memref<128x128xf32, #tpu.memory_space<vmem>>, %arg6: memref<1x128xf32, #tpu.memory_space<vmem>>, %arg7: memref<1x1x128xf32, #tpu.memory_space<vmem>>, %arg8: memref<1x1x128xf32, #tpu.memory_space<vmem>>, %arg9: memref<1x1x128xf32, #tpu.memory_space<vmem>>, %arg10: memref<1x128xf32, #tpu.memory_space<vmem>>) attributes {dimension_semantics = [#tpu.dimension_semantics<parallel>, #tpu.dimension_semantics<arbitrary>], iteration_bounds = array<i64: 2, 2>, scalar_prefetch = 0 : i64, scratch_operands = 1 : i64, tpu.core_type = #tpu.core_type<tc>, window_params = [{transform_indices = @transform_0, window_bounds = array<i64: 1, 128, 36>}, {pipeline_mode = #tpu.pipeline_mode<synchronous>, transform_indices = @transform_1, window_bounds = array<i64: 36, 128>}, {pipeline_mode = #tpu.pipeline_mode<synchronous>, transform_indices = @transform_2, window_bounds = array<i64: 1, 128>}, {pipeline_mode = #tpu.pipeline_mode<synchronous>, transform_indices = @transform_3, window_bounds = array<i64: 128, 128>}, {pipeline_mode = #tpu.pipeline_mode<synchronous>, transform_indices = @transform_4, window_bounds = array<i64: 1, 128>}, {transform_indices = @transform_5, window_bounds = array<i64: 1, 1, 128>}, {transform_indices = @transform_6, window_bounds = array<i64: 1, 1, 128>}, {transform_indices = @transform_7, window_bounds = array<i64: 1, 1, 128>}]} {
    %c0_i32 = arith.constant 0 : i32
    %0 = arith.cmpi eq, %arg1, %c0_i32 : i32
    %1 = arith.extui %0 : i1 to i32
    %c0_i32_0 = arith.constant 0 : i32
    %2 = arith.cmpi ne, %1, %c0_i32_0 : i32
    scf.if %2 {
      %cst_15 = arith.constant 0.000000e+00 : f32
      %22 = vector.broadcast %cst_15 : f32 to vector<1x128xf32>
      %c0_16 = arith.constant 0 : index
      %c0_17 = arith.constant 0 : index
      %23 = vector.load %arg10[%c0_16, %c0_17] : memref<1x128xf32, #tpu.memory_space<vmem>>, vector<1x128xf32>
      tpu.vector_store %arg10[%c0_16, %c0_17], %22 {strides = array<i32>} : memref<1x128xf32, #tpu.memory_space<vmem>>, vector<1x128xf32>,
    } else {
    }
    %c0 = arith.constant 0 : index
    %c0_1 = arith.constant 0 : index
    %c0_2 = arith.constant 0 : index
    %3 = vector.load %arg2[%c0, %c0_1, %c0_2] : memref<1x128x36xf32, #tpu.memory_space<vmem>>, vector<1x128x36xf32>
    %4 = vector.shape_cast %3 : vector<1x128x36xf32> to vector<128x36xf32>
    %5 = arith.truncf %4 : vector<128x36xf32> to vector<128x36xbf16>
    %c0_3 = arith.constant 0 : index
    %c0_4 = arith.constant 0 : index
    %6 = vector.load %arg3[%c0_3, %c0_4] : memref<36x128xf32, #tpu.memory_space<vmem>>, vector<36x128xf32>
    %7 = arith.truncf %6 : vector<36x128xf32> to vector<36x128xbf16>
    %cst = arith.constant dense<0.000000e+00> : vector<128x128xf32>
    %8 = tpu.matmul %5, %7, %cst {dimension_numbers = #tpu.dot_dimension_numbers<[1], [0], [0], [1], [0, 0, 1, 1], [], []>} : vector<128x36xbf16>, vector<36x128xbf16>, vector<128x128xf32> -> vector<128x128xf32>
    %c0_5 = arith.constant 0 : index
    %c0_6 = arith.constant 0 : index
    %9 = vector.load %arg4[%c0_5, %c0_6] : memref<1x128xf32, #tpu.memory_space<vmem>>, vector<1x128xf32>
    %10 = vector.broadcast %9 : vector<1x128xf32> to vector<128x128xf32>
    %11 = arith.addf %8, %10 : vector<128x128xf32>
    %cst_7 = arith.constant 0.000000e+00 : f32
    %12 = vector.broadcast %cst_7 : f32 to vector<128x128xf32>
    %13 = arith.maximumf %11, %12 : vector<128x128xf32>
    %cst_8 = arith.constant 3.906250e-03 : f32
    %14 = vector.broadcast %cst_8 : f32 to vector<1x128xf32>
    %c0_9 = arith.constant 0 : index
    %c0_10 = arith.constant 0 : index
    %15 = vector.load %arg10[%c0_9, %c0_10] : memref<1x128xf32, #tpu.memory_space<vmem>>, vector<1x128xf32>
    %cst_11 = arith.constant dense<0.000000e+00> : vector<1x128xf32>
    %16 = tpu.matmul %14, %13, %cst_11 {dimension_numbers = #tpu.dot_dimension_numbers<[1], [0], [0], [1], [0, 0, 1, 1], [], []>} : vector<1x128xf32>, vector<128x128xf32>, vector<1x128xf32> -> vector<1x128xf32>
    %17 = arith.addf %15, %16 : vector<1x128xf32>
    %c0_12 = arith.constant 0 : index
    %c0_13 = arith.constant 0 : index
    %18 = vector.load %arg10[%c0_12, %c0_13] : memref<1x128xf32, #tpu.memory_space<vmem>>, vector<1x128xf32>
    tpu.vector_store %arg10[%c0_12, %c0_13], %17 {strides = array<i32>} : memref<1x128xf32, #tpu.memory_space<vmem>>, vector<1x128xf32>,
    %c1_i32 = arith.constant 1 : i32
    %19 = arith.cmpi eq, %arg1, %c1_i32 : i32
    %20 = arith.extui %19 : i1 to i32
    %c0_i32_14 = arith.constant 0 : i32
    %21 = arith.cmpi ne, %20, %c0_i32_14 : i32
    scf.if %21 {
      %c0_15 = arith.constant 0 : index
      %c0_16 = arith.constant 0 : index
      %22 = vector.load %arg10[%c0_15, %c0_16] : memref<1x128xf32, #tpu.memory_space<vmem>>, vector<1x128xf32>
      %c0_17 = arith.constant 0 : index
      %c0_18 = arith.constant 0 : index
      %c0_19 = arith.constant 0 : index
      %23 = vector.load %arg8[%c0_17, %c0_18, %c0_19] : memref<1x1x128xf32, #tpu.memory_space<vmem>>, vector<1x1x128xf32>
      %24 = vector.shape_cast %23 : vector<1x1x128xf32> to vector<1x128xf32>
      %25 = vector.shape_cast %22 : vector<1x128xf32> to vector<1x1x128xf32>
      tpu.vector_store %arg8[%c0_17, %c0_18, %c0_19], %25 {strides = array<i32>} : memref<1x1x128xf32, #tpu.memory_space<vmem>>, vector<1x1x128xf32>,
      %26 = arith.truncf %22 : vector<1x128xf32> to vector<1x128xbf16>
      %c0_20 = arith.constant 0 : index
      %c0_21 = arith.constant 0 : index
      %27 = vector.load %arg5[%c0_20, %c0_21] : memref<128x128xf32, #tpu.memory_space<vmem>>, vector<128x128xf32>
      %28 = arith.truncf %27 : vector<128x128xf32> to vector<128x128xbf16>
      %cst_22 = arith.constant dense<0.000000e+00> : vector<1x128xf32>
      %29 = tpu.matmul %26, %28, %cst_22 {dimension_numbers = #tpu.dot_dimension_numbers<[1], [0], [0], [1], [0, 0, 1, 1], [], []>} : vector<1x128xbf16>, vector<128x128xbf16>, vector<1x128xf32> -> vector<1x128xf32>
      %c0_23 = arith.constant 0 : index
      %c0_24 = arith.constant 0 : index
      %30 = vector.load %arg6[%c0_23, %c0_24] : memref<1x128xf32, #tpu.memory_space<vmem>>, vector<1x128xf32>
      %31 = arith.addf %29, %30 : vector<1x128xf32>
      %cst_25 = arith.constant 0.000000e+00 : f32
      %32 = vector.broadcast %cst_25 : f32 to vector<1x128xf32>
      %33 = arith.maximumf %31, %32 : vector<1x128xf32>
      %c0_26 = arith.constant 0 : index
      %c0_27 = arith.constant 0 : index
      %c0_28 = arith.constant 0 : index
      %34 = vector.load %arg7[%c0_26, %c0_27, %c0_28] : memref<1x1x128xf32, #tpu.memory_space<vmem>>, vector<1x1x128xf32>
      %35 = vector.shape_cast %34 : vector<1x1x128xf32> to vector<1x128xf32>
      %cst_29 = arith.constant 5.000000e-01 : f32
      %36 = vector.broadcast %cst_29 : f32 to vector<1x128xf32>
      %37 = arith.cmpf olt, %35, %36 : vector<1x128xf32>
      %cst_30 = arith.constant 2.000000e+00 : f32
      %38 = vector.broadcast %cst_30 : f32 to vector<1x128xf32>
      %39 = arith.mulf %33, %38 : vector<1x128xf32>
      %cst_31 = arith.constant 0.000000e+00 : f32
      %40 = vector.broadcast %cst_31 : f32 to vector<1x128xf32>
      %41 = arith.select %37, %39, %40 : vector<1x128xi1>, vector<1x128xf32>
      %c0_32 = arith.constant 0 : index
      %c0_33 = arith.constant 0 : index
      %c0_34 = arith.constant 0 : index
      %42 = vector.load %arg9[%c0_32, %c0_33, %c0_34] : memref<1x1x128xf32, #tpu.memory_space<vmem>>, vector<1x1x128xf32>
      %43 = vector.shape_cast %42 : vector<1x1x128xf32> to vector<1x128xf32>
      %44 = vector.shape_cast %41 : vector<1x128xf32> to vector<1x1x128xf32>
      tpu.vector_store %arg9[%c0_32, %c0_33, %c0_34], %44 {strides = array<i32>} : memref<1x1x128xf32, #tpu.memory_space<vmem>>, vector<1x1x128xf32>,
    } else {
    }
    return
  }
  func.func @transform_0(%arg0: i32, %arg1: i32) -> (i32, i32, i32) {
    %c0_i32 = arith.constant 0 : i32
    %c0_i32_0 = arith.constant 0 : i32
    return %arg0, %arg1, %c0_i32 : i32, i32, i32
  }
  func.func @transform_1(%arg0: i32, %arg1: i32) -> (i32, i32) {
    %c0_i32 = arith.constant 0 : i32
    %c0_i32_0 = arith.constant 0 : i32
    %c0_i32_1 = arith.constant 0 : i32
    return %c0_i32, %c0_i32_0 : i32, i32
  }
  func.func @transform_2(%arg0: i32, %arg1: i32) -> (i32, i32) {
    %c0_i32 = arith.constant 0 : i32
    %c0_i32_0 = arith.constant 0 : i32
    %c0_i32_1 = arith.constant 0 : i32
    return %c0_i32, %c0_i32_0 : i32, i32
  }
  func.func @transform_3(%arg0: i32, %arg1: i32) -> (i32, i32) {
    %c0_i32 = arith.constant 0 : i32
    %c0_i32_0 = arith.constant 0 : i32
    %c0_i32_1 = arith.constant 0 : i32
    return %c0_i32, %c0_i32_0 : i32, i32
  }
  func.func @transform_4(%arg0: i32, %arg1: i32) -> (i32, i32) {
    %c0_i32 = arith.constant 0 : i32
    %c0_i32_0 = arith.constant 0 : i32
    %c0_i32_1 = arith.constant 0 : i32
    return %c0_i32, %c0_i32_0 : i32, i32
  }
  func.func @transform_5(%arg0: i32, %arg1: i32) -> (i32, i32, i32) {
    %c0_i32 = arith.constant 0 : i32
    %c0_i32_0 = arith.constant 0 : i32
    %c0_i32_1 = arith.constant 0 : i32
    return %arg0, %c0_i32, %c0_i32_0 : i32, i32, i32
  }
  func.func @transform_6(%arg0: i32, %arg1: i32) -> (i32, i32, i32) {
    %c0_i32 = arith.constant 0 : i32
    %c0_i32_0 = arith.constant 0 : i32
    %c0_i32_1 = arith.constant 0 : i32
    return %arg0, %c0_i32, %c0_i32_0 : i32, i32, i32
  }
  func.func @transform_7(%arg0: i32, %arg1: i32) -> (i32, i32, i32) {
    %c0_i32 = arith.constant 0 : i32
    %c0_i32_0 = arith.constant 0 : i32
    %c0_i32_1 = arith.constant 0 : i32
    return %arg0, %c0_i32, %c0_i32_0 : i32, i32, i32
  }
}

module attributes {stable_mosaic.version = 11 : i64} {
  func.func @kernel(%arg0: i32, %arg1: memref<2x128xf32, #tpu.memory_space<vmem>>, %arg2: memref<1x2x256xf32, #tpu.memory_space<vmem>>, %arg3: memref<1x2x128xf32, #tpu.memory_space<vmem>>, %arg4: memref<256x128xf32, #tpu.memory_space<vmem>>, %arg5: memref<128x512xf32, #tpu.memory_space<vmem>>, %arg6: memref<128x512xf32, #tpu.memory_space<vmem>>, %arg7: memref<1x512xf32, #tpu.memory_space<vmem>>, %arg8: memref<128x512xf32, #tpu.memory_space<vmem>>, %arg9: memref<128x512xf32, #tpu.memory_space<vmem>>, %arg10: memref<1x512xf32, #tpu.memory_space<vmem>>, %arg11: memref<128x256xf32, #tpu.memory_space<vmem>>, %arg12: memref<1x256xf32, #tpu.memory_space<vmem>>, %arg13: memref<1x2x256xf32, #tpu.memory_space<vmem>>, %arg14: memref<2x2x128xf32, #tpu.memory_space<vmem>>, %arg15: memref<2x2x128xf32, #tpu.memory_space<vmem>>) attributes {dimension_semantics = [#tpu.dimension_semantics<arbitrary>], iteration_bounds = array<i64: 9>, scalar_prefetch = 0 : i64, scratch_operands = 2 : i64, tpu.core_type = #tpu.core_type<tc>, window_params = [{pipeline_mode = #tpu.pipeline_mode<synchronous>, transform_indices = @transform_0, window_bounds = array<i64: 2, 128>}, {transform_indices = @transform_1, window_bounds = array<i64: 1, 2, 256>}, {transform_indices = @transform_2, window_bounds = array<i64: 1, 2, 128>}, {pipeline_mode = #tpu.pipeline_mode<synchronous>, transform_indices = @transform_3, window_bounds = array<i64: 256, 128>}, {pipeline_mode = #tpu.pipeline_mode<synchronous>, transform_indices = @transform_4, window_bounds = array<i64: 128, 512>}, {pipeline_mode = #tpu.pipeline_mode<synchronous>, transform_indices = @transform_5, window_bounds = array<i64: 128, 512>}, {pipeline_mode = #tpu.pipeline_mode<synchronous>, transform_indices = @transform_6, window_bounds = array<i64: 1, 512>}, {pipeline_mode = #tpu.pipeline_mode<synchronous>, transform_indices = @transform_7, window_bounds = array<i64: 128, 512>}, {pipeline_mode = #tpu.pipeline_mode<synchronous>, transform_indices = @transform_8, window_bounds = array<i64: 128, 512>}, {pipeline_mode = #tpu.pipeline_mode<synchronous>, transform_indices = @transform_9, window_bounds = array<i64: 1, 512>}, {pipeline_mode = #tpu.pipeline_mode<synchronous>, transform_indices = @transform_10, window_bounds = array<i64: 128, 256>}, {pipeline_mode = #tpu.pipeline_mode<synchronous>, transform_indices = @transform_11, window_bounds = array<i64: 1, 256>}, {transform_indices = @transform_12, window_bounds = array<i64: 1, 2, 256>}]} {
    %c0_i32 = arith.constant 0 : i32
    %0 = arith.cmpi eq, %arg0, %c0_i32 : i32
    %1 = arith.extui %0 : i1 to i32
    %c0_i32_0 = arith.constant 0 : i32
    %2 = arith.cmpi ne, %1, %c0_i32_0 : i32
    scf.if %2 {
      %cst_80 = arith.constant 0.000000e+00 : f32
      %143 = vector.broadcast %cst_80 : f32 to vector<2x2x128xf32>
      %c0_81 = arith.constant 0 : index
      %c0_82 = arith.constant 0 : index
      %c0_83 = arith.constant 0 : index
      %144 = vector.load %arg14[%c0_81, %c0_82, %c0_83] : memref<2x2x128xf32, #tpu.memory_space<vmem>>, vector<2x2x128xf32>
      tpu.vector_store %arg14[%c0_81, %c0_82, %c0_83], %143 {strides = array<i32>} : memref<2x2x128xf32, #tpu.memory_space<vmem>>, vector<2x2x128xf32>,
      %cst_84 = arith.constant 0.000000e+00 : f32
      %145 = vector.broadcast %cst_84 : f32 to vector<2x2x128xf32>
      %c0_85 = arith.constant 0 : index
      %c0_86 = arith.constant 0 : index
      %c0_87 = arith.constant 0 : index
      %146 = vector.load %arg15[%c0_85, %c0_86, %c0_87] : memref<2x2x128xf32, #tpu.memory_space<vmem>>, vector<2x2x128xf32>
      tpu.vector_store %arg15[%c0_85, %c0_86, %c0_87], %145 {strides = array<i32>} : memref<2x2x128xf32, #tpu.memory_space<vmem>>, vector<2x2x128xf32>,
    } else {
    }
    %c0 = arith.constant 0 : index
    %c0_1 = arith.constant 0 : index
    %c0_2 = arith.constant 0 : index
    %3 = vector.load %arg2[%c0, %c0_1, %c0_2] : memref<1x2x256xf32, #tpu.memory_space<vmem>>, vector<1x2x256xf32>
    %4 = vector.shape_cast %3 : vector<1x2x256xf32> to vector<2x256xf32>
    %5 = arith.truncf %4 : vector<2x256xf32> to vector<2x256xbf16>
    %c0_3 = arith.constant 0 : index
    %c0_4 = arith.constant 0 : index
    %6 = vector.load %arg4[%c0_3, %c0_4] : memref<256x128xf32, #tpu.memory_space<vmem>>, vector<256x128xf32>
    %7 = arith.truncf %6 : vector<256x128xf32> to vector<256x128xbf16>
    %cst = arith.constant dense<0.000000e+00> : vector<2x128xf32>
    %8 = tpu.matmul %5, %7, %cst {dimension_numbers = #tpu.dot_dimension_numbers<[1], [0], [0], [1], [0, 0, 1, 1], [], []>} : vector<2x256xbf16>, vector<256x128xbf16>, vector<2x128xf32> -> vector<2x128xf32>
    %c0_5 = arith.constant 0 : index
    %c0_6 = arith.constant 0 : index
    %c0_7 = arith.constant 0 : index
    %9 = vector.load %arg3[%c0_5, %c0_6, %c0_7] : memref<1x2x128xf32, #tpu.memory_space<vmem>>, vector<1x2x128xf32>
    %10 = vector.shape_cast %9 : vector<1x2x128xf32> to vector<2x128xf32>
    %cst_8 = arith.constant 5.000000e-01 : f32
    %11 = vector.broadcast %cst_8 : f32 to vector<2x128xf32>
    %12 = arith.cmpf olt, %10, %11 : vector<2x128xf32>
    %cst_9 = arith.constant 2.000000e+00 : f32
    %13 = vector.broadcast %cst_9 : f32 to vector<2x128xf32>
    %14 = arith.mulf %8, %13 : vector<2x128xf32>
    %cst_10 = arith.constant 0.000000e+00 : f32
    %15 = vector.broadcast %cst_10 : f32 to vector<2x128xf32>
    %16 = arith.select %12, %14, %15 : vector<2x128xi1>, vector<2x128xf32>
    %c0_i32_11 = arith.constant 0 : i32
    %17 = arith.cmpi eq, %arg0, %c0_i32_11 : i32
    %18 = arith.extui %17 : i1 to i32
    %19 = arith.sitofp %18 : i32 to f32
    %c0_12 = arith.constant 0 : index
    %c0_13 = arith.constant 0 : index
    %20 = vector.load %arg1[%c0_12, %c0_13] : memref<2x128xf32, #tpu.memory_space<vmem>>, vector<2x128xf32>
    %21 = vector.broadcast %19 : f32 to vector<2x128xf32>
    %22 = arith.mulf %21, %20 : vector<2x128xf32>
    %cst_14 = arith.constant 1.000000e+00 : f32
    %23 = arith.subf %cst_14, %19 : f32
    %24 = vector.broadcast %23 : f32 to vector<2x128xf32>
    %25 = arith.mulf %24, %16 : vector<2x128xf32>
    %26 = arith.addf %22, %25 : vector<2x128xf32>
    %c0_15 = arith.constant 0 : index
    %c0_16 = arith.constant 0 : index
    %27 = vector.load %arg5[%c0_15, %c0_16] : memref<128x512xf32, #tpu.memory_space<vmem>>, vector<128x512xf32>
    %28 = arith.truncf %27 : vector<128x512xf32> to vector<128x512xbf16>
    %c0_17 = arith.constant 0 : index
    %c0_18 = arith.constant 0 : index
    %29 = vector.load %arg6[%c0_17, %c0_18] : memref<128x512xf32, #tpu.memory_space<vmem>>, vector<128x512xf32>
    %30 = arith.truncf %29 : vector<128x512xf32> to vector<128x512xbf16>
    %c0_19 = arith.constant 0 : index
    %c0_20 = arith.constant 0 : index
    %31 = vector.load %arg7[%c0_19, %c0_20] : memref<1x512xf32, #tpu.memory_space<vmem>>, vector<1x512xf32>
    %c0_21 = arith.constant 0 : index
    %c0_22 = arith.constant 0 : index
    %c0_23 = arith.constant 0 : index
    %32 = vector.load %arg14[%c0_21, %c0_22, %c0_23] : memref<2x2x128xf32, #tpu.memory_space<vmem>>, vector<1x2x128xf32>
    %33 = vector.shape_cast %32 : vector<1x2x128xf32> to vector<2x128xf32>
    %c0_24 = arith.constant 0 : index
    %c0_25 = arith.constant 0 : index
    %c0_26 = arith.constant 0 : index
    %34 = vector.load %arg15[%c0_24, %c0_25, %c0_26] : memref<2x2x128xf32, #tpu.memory_space<vmem>>, vector<1x2x128xf32>
    %35 = vector.shape_cast %34 : vector<1x2x128xf32> to vector<2x128xf32>
    %36 = arith.truncf %26 : vector<2x128xf32> to vector<2x128xbf16>
    %cst_27 = arith.constant dense<0.000000e+00> : vector<2x512xf32>
    %37 = tpu.matmul %36, %28, %cst_27 {dimension_numbers = #tpu.dot_dimension_numbers<[1], [0], [0], [1], [0, 0, 1, 1], [], []>} : vector<2x128xbf16>, vector<128x512xbf16>, vector<2x512xf32> -> vector<2x512xf32>
    %38 = arith.truncf %33 : vector<2x128xf32> to vector<2x128xbf16>
    %cst_28 = arith.constant dense<0.000000e+00> : vector<2x512xf32>
    %39 = tpu.matmul %38, %30, %cst_28 {dimension_numbers = #tpu.dot_dimension_numbers<[1], [0], [0], [1], [0, 0, 1, 1], [], []>} : vector<2x128xbf16>, vector<128x512xbf16>, vector<2x512xf32> -> vector<2x512xf32>
    %40 = arith.addf %37, %39 : vector<2x512xf32>
    %41 = vector.broadcast %31 : vector<1x512xf32> to vector<2x512xf32>
    %42 = arith.addf %40, %41 : vector<2x512xf32>
    %43 = vector.extract_strided_slice %42 {offsets = [0, 0], sizes = [2, 128], strides = [1, 1]} : vector<2x512xf32> to vector<2x128xf32>
    %cst_29 = arith.constant 0.000000e+00 : f32
    %44 = vector.broadcast %cst_29 : f32 to vector<2x128xf32>
    %45 = arith.subf %44, %43 : vector<2x128xf32>
    %46 = math.exp %45 : vector<2x128xf32>
    %cst_30 = arith.constant 1.000000e+00 : f32
    %47 = vector.broadcast %cst_30 : f32 to vector<2x128xf32>
    %48 = arith.addf %47, %46 : vector<2x128xf32>
    %cst_31 = arith.constant 1.000000e+00 : f32
    %49 = vector.broadcast %cst_31 : f32 to vector<2x128xf32>
    %50 = arith.divf %49, %48 : vector<2x128xf32>
    %51 = vector.extract_strided_slice %42 {offsets = [0, 128], sizes = [2, 128], strides = [1, 1]} : vector<2x512xf32> to vector<2x128xf32>
    %cst_32 = arith.constant 0.000000e+00 : f32
    %52 = vector.broadcast %cst_32 : f32 to vector<2x128xf32>
    %53 = arith.subf %52, %51 : vector<2x128xf32>
    %54 = math.exp %53 : vector<2x128xf32>
    %cst_33 = arith.constant 1.000000e+00 : f32
    %55 = vector.broadcast %cst_33 : f32 to vector<2x128xf32>
    %56 = arith.addf %55, %54 : vector<2x128xf32>
    %cst_34 = arith.constant 1.000000e+00 : f32
    %57 = vector.broadcast %cst_34 : f32 to vector<2x128xf32>
    %58 = arith.divf %57, %56 : vector<2x128xf32>
    %59 = vector.extract_strided_slice %42 {offsets = [0, 256], sizes = [2, 128], strides = [1, 1]} : vector<2x512xf32> to vector<2x128xf32>
    %60 = math.tanh %59 : vector<2x128xf32>
    %61 = vector.extract_strided_slice %42 {offsets = [0, 384], sizes = [2, 128], strides = [1, 1]} : vector<2x512xf32> to vector<2x128xf32>
    %cst_35 = arith.constant 0.000000e+00 : f32
    %62 = vector.broadcast %cst_35 : f32 to vector<2x128xf32>
    %63 = arith.subf %62, %61 : vector<2x128xf32>
    %64 = math.exp %63 : vector<2x128xf32>
    %cst_36 = arith.constant 1.000000e+00 : f32
    %65 = vector.broadcast %cst_36 : f32 to vector<2x128xf32>
    %66 = arith.addf %65, %64 : vector<2x128xf32>
    %cst_37 = arith.constant 1.000000e+00 : f32
    %67 = vector.broadcast %cst_37 : f32 to vector<2x128xf32>
    %68 = arith.divf %67, %66 : vector<2x128xf32>
    %69 = arith.mulf %58, %35 : vector<2x128xf32>
    %70 = arith.mulf %50, %60 : vector<2x128xf32>
    %71 = arith.addf %69, %70 : vector<2x128xf32>
    %72 = math.tanh %71 : vector<2x128xf32>
    %73 = arith.mulf %68, %72 : vector<2x128xf32>
    %c0_38 = arith.constant 0 : index
    %c0_39 = arith.constant 0 : index
    %c0_40 = arith.constant 0 : index
    %74 = vector.load %arg15[%c0_38, %c0_39, %c0_40] : memref<2x2x128xf32, #tpu.memory_space<vmem>>, vector<1x2x128xf32>
    %75 = vector.shape_cast %74 : vector<1x2x128xf32> to vector<2x128xf32>
    %76 = vector.shape_cast %71 : vector<2x128xf32> to vector<1x2x128xf32>
    tpu.vector_store %arg15[%c0_38, %c0_39, %c0_40], %76 {strides = array<i32>} : memref<2x2x128xf32, #tpu.memory_space<vmem>>, vector<1x2x128xf32>,
    %c0_41 = arith.constant 0 : index
    %c0_42 = arith.constant 0 : index
    %c0_43 = arith.constant 0 : index
    %77 = vector.load %arg14[%c0_41, %c0_42, %c0_43] : memref<2x2x128xf32, #tpu.memory_space<vmem>>, vector<1x2x128xf32>
    %78 = vector.shape_cast %77 : vector<1x2x128xf32> to vector<2x128xf32>
    %79 = vector.shape_cast %73 : vector<2x128xf32> to vector<1x2x128xf32>
    tpu.vector_store %arg14[%c0_41, %c0_42, %c0_43], %79 {strides = array<i32>} : memref<2x2x128xf32, #tpu.memory_space<vmem>>, vector<1x2x128xf32>,
    %c0_44 = arith.constant 0 : index
    %c0_45 = arith.constant 0 : index
    %80 = vector.load %arg8[%c0_44, %c0_45] : memref<128x512xf32, #tpu.memory_space<vmem>>, vector<128x512xf32>
    %81 = arith.truncf %80 : vector<128x512xf32> to vector<128x512xbf16>
    %c0_46 = arith.constant 0 : index
    %c0_47 = arith.constant 0 : index
    %82 = vector.load %arg9[%c0_46, %c0_47] : memref<128x512xf32, #tpu.memory_space<vmem>>, vector<128x512xf32>
    %83 = arith.truncf %82 : vector<128x512xf32> to vector<128x512xbf16>
    %c0_48 = arith.constant 0 : index
    %c0_49 = arith.constant 0 : index
    %84 = vector.load %arg10[%c0_48, %c0_49] : memref<1x512xf32, #tpu.memory_space<vmem>>, vector<1x512xf32>
    %c1 = arith.constant 1 : index
    %c0_50 = arith.constant 0 : index
    %c0_51 = arith.constant 0 : index
    %85 = vector.load %arg14[%c1, %c0_50, %c0_51] : memref<2x2x128xf32, #tpu.memory_space<vmem>>, vector<1x2x128xf32>
    %86 = vector.shape_cast %85 : vector<1x2x128xf32> to vector<2x128xf32>
    %c1_52 = arith.constant 1 : index
    %c0_53 = arith.constant 0 : index
    %c0_54 = arith.constant 0 : index
    %87 = vector.load %arg15[%c1_52, %c0_53, %c0_54] : memref<2x2x128xf32, #tpu.memory_space<vmem>>, vector<1x2x128xf32>
    %88 = vector.shape_cast %87 : vector<1x2x128xf32> to vector<2x128xf32>
    %89 = arith.truncf %73 : vector<2x128xf32> to vector<2x128xbf16>
    %cst_55 = arith.constant dense<0.000000e+00> : vector<2x512xf32>
    %90 = tpu.matmul %89, %81, %cst_55 {dimension_numbers = #tpu.dot_dimension_numbers<[1], [0], [0], [1], [0, 0, 1, 1], [], []>} : vector<2x128xbf16>, vector<128x512xbf16>, vector<2x512xf32> -> vector<2x512xf32>
    %91 = arith.truncf %86 : vector<2x128xf32> to vector<2x128xbf16>
    %cst_56 = arith.constant dense<0.000000e+00> : vector<2x512xf32>
    %92 = tpu.matmul %91, %83, %cst_56 {dimension_numbers = #tpu.dot_dimension_numbers<[1], [0], [0], [1], [0, 0, 1, 1], [], []>} : vector<2x128xbf16>, vector<128x512xbf16>, vector<2x512xf32> -> vector<2x512xf32>
    %93 = arith.addf %90, %92 : vector<2x512xf32>
    %94 = vector.broadcast %84 : vector<1x512xf32> to vector<2x512xf32>
    %95 = arith.addf %93, %94 : vector<2x512xf32>
    %96 = vector.extract_strided_slice %95 {offsets = [0, 0], sizes = [2, 128], strides = [1, 1]} : vector<2x512xf32> to vector<2x128xf32>
    %cst_57 = arith.constant 0.000000e+00 : f32
    %97 = vector.broadcast %cst_57 : f32 to vector<2x128xf32>
    %98 = arith.subf %97, %96 : vector<2x128xf32>
    %99 = math.exp %98 : vector<2x128xf32>
    %cst_58 = arith.constant 1.000000e+00 : f32
    %100 = vector.broadcast %cst_58 : f32 to vector<2x128xf32>
    %101 = arith.addf %100, %99 : vector<2x128xf32>
    %cst_59 = arith.constant 1.000000e+00 : f32
    %102 = vector.broadcast %cst_59 : f32 to vector<2x128xf32>
    %103 = arith.divf %102, %101 : vector<2x128xf32>
    %104 = vector.extract_strided_slice %95 {offsets = [0, 128], sizes = [2, 128], strides = [1, 1]} : vector<2x512xf32> to vector<2x128xf32>
    %cst_60 = arith.constant 0.000000e+00 : f32
    %105 = vector.broadcast %cst_60 : f32 to vector<2x128xf32>
    %106 = arith.subf %105, %104 : vector<2x128xf32>
    %107 = math.exp %106 : vector<2x128xf32>
    %cst_61 = arith.constant 1.000000e+00 : f32
    %108 = vector.broadcast %cst_61 : f32 to vector<2x128xf32>
    %109 = arith.addf %108, %107 : vector<2x128xf32>
    %cst_62 = arith.constant 1.000000e+00 : f32
    %110 = vector.broadcast %cst_62 : f32 to vector<2x128xf32>
    %111 = arith.divf %110, %109 : vector<2x128xf32>
    %112 = vector.extract_strided_slice %95 {offsets = [0, 256], sizes = [2, 128], strides = [1, 1]} : vector<2x512xf32> to vector<2x128xf32>
    %113 = math.tanh %112 : vector<2x128xf32>
    %114 = vector.extract_strided_slice %95 {offsets = [0, 384], sizes = [2, 128], strides = [1, 1]} : vector<2x512xf32> to vector<2x128xf32>
    %cst_63 = arith.constant 0.000000e+00 : f32
    %115 = vector.broadcast %cst_63 : f32 to vector<2x128xf32>
    %116 = arith.subf %115, %114 : vector<2x128xf32>
    %117 = math.exp %116 : vector<2x128xf32>
    %cst_64 = arith.constant 1.000000e+00 : f32
    %118 = vector.broadcast %cst_64 : f32 to vector<2x128xf32>
    %119 = arith.addf %118, %117 : vector<2x128xf32>
    %cst_65 = arith.constant 1.000000e+00 : f32
    %120 = vector.broadcast %cst_65 : f32 to vector<2x128xf32>
    %121 = arith.divf %120, %119 : vector<2x128xf32>
    %122 = arith.mulf %111, %88 : vector<2x128xf32>
    %123 = arith.mulf %103, %113 : vector<2x128xf32>
    %124 = arith.addf %122, %123 : vector<2x128xf32>
    %125 = math.tanh %124 : vector<2x128xf32>
    %126 = arith.mulf %121, %125 : vector<2x128xf32>
    %c1_66 = arith.constant 1 : index
    %c0_67 = arith.constant 0 : index
    %c0_68 = arith.constant 0 : index
    %127 = vector.load %arg15[%c1_66, %c0_67, %c0_68] : memref<2x2x128xf32, #tpu.memory_space<vmem>>, vector<1x2x128xf32>
    %128 = vector.shape_cast %127 : vector<1x2x128xf32> to vector<2x128xf32>
    %129 = vector.shape_cast %124 : vector<2x128xf32> to vector<1x2x128xf32>
    tpu.vector_store %arg15[%c1_66, %c0_67, %c0_68], %129 {strides = array<i32>} : memref<2x2x128xf32, #tpu.memory_space<vmem>>, vector<1x2x128xf32>,
    %c1_69 = arith.constant 1 : index
    %c0_70 = arith.constant 0 : index
    %c0_71 = arith.constant 0 : index
    %130 = vector.load %arg14[%c1_69, %c0_70, %c0_71] : memref<2x2x128xf32, #tpu.memory_space<vmem>>, vector<1x2x128xf32>
    %131 = vector.shape_cast %130 : vector<1x2x128xf32> to vector<2x128xf32>
    %132 = vector.shape_cast %126 : vector<2x128xf32> to vector<1x2x128xf32>
    tpu.vector_store %arg14[%c1_69, %c0_70, %c0_71], %132 {strides = array<i32>} : memref<2x2x128xf32, #tpu.memory_space<vmem>>, vector<1x2x128xf32>,
    %133 = arith.truncf %126 : vector<2x128xf32> to vector<2x128xbf16>
    %c0_72 = arith.constant 0 : index
    %c0_73 = arith.constant 0 : index
    %134 = vector.load %arg11[%c0_72, %c0_73] : memref<128x256xf32, #tpu.memory_space<vmem>>, vector<128x256xf32>
    %135 = arith.truncf %134 : vector<128x256xf32> to vector<128x256xbf16>
    %cst_74 = arith.constant dense<0.000000e+00> : vector<2x256xf32>
    %136 = tpu.matmul %133, %135, %cst_74 {dimension_numbers = #tpu.dot_dimension_numbers<[1], [0], [0], [1], [0, 0, 1, 1], [], []>} : vector<2x128xbf16>, vector<128x256xbf16>, vector<2x256xf32> -> vector<2x256xf32>
    %c0_75 = arith.constant 0 : index
    %c0_76 = arith.constant 0 : index
    %137 = vector.load %arg12[%c0_75, %c0_76] : memref<1x256xf32, #tpu.memory_space<vmem>>, vector<1x256xf32>
    %138 = vector.broadcast %137 : vector<1x256xf32> to vector<2x256xf32>
    %139 = arith.addf %136, %138 : vector<2x256xf32>
    %c0_77 = arith.constant 0 : index
    %c0_78 = arith.constant 0 : index
    %c0_79 = arith.constant 0 : index
    %140 = vector.load %arg13[%c0_77, %c0_78, %c0_79] : memref<1x2x256xf32, #tpu.memory_space<vmem>>, vector<1x2x256xf32>
    %141 = vector.shape_cast %140 : vector<1x2x256xf32> to vector<2x256xf32>
    %142 = vector.shape_cast %139 : vector<2x256xf32> to vector<1x2x256xf32>
    tpu.vector_store %arg13[%c0_77, %c0_78, %c0_79], %142 {strides = array<i32>} : memref<1x2x256xf32, #tpu.memory_space<vmem>>, vector<1x2x256xf32>,
    return
  }
  func.func @transform_0(%arg0: i32) -> (i32, i32) {
    %c0_i32 = arith.constant 0 : i32
    %c0_i32_0 = arith.constant 0 : i32
    %c0_i32_1 = arith.constant 0 : i32
    return %c0_i32, %c0_i32_0 : i32, i32
  }
  func.func @transform_1(%arg0: i32) -> (i32, i32, i32) {
    %c0_i32 = arith.constant 0 : i32
    %c0_i32_0 = arith.constant 0 : i32
    %c0_i32_1 = arith.constant 0 : i32
    return %arg0, %c0_i32, %c0_i32_0 : i32, i32, i32
  }
  func.func @transform_2(%arg0: i32) -> (i32, i32, i32) {
    %c0_i32 = arith.constant 0 : i32
    %c0_i32_0 = arith.constant 0 : i32
    %c0_i32_1 = arith.constant 0 : i32
    return %arg0, %c0_i32, %c0_i32_0 : i32, i32, i32
  }
  func.func @transform_3(%arg0: i32) -> (i32, i32) {
    %c0_i32 = arith.constant 0 : i32
    %c0_i32_0 = arith.constant 0 : i32
    %c0_i32_1 = arith.constant 0 : i32
    return %c0_i32, %c0_i32_0 : i32, i32
  }
  func.func @transform_4(%arg0: i32) -> (i32, i32) {
    %c0_i32 = arith.constant 0 : i32
    %c0_i32_0 = arith.constant 0 : i32
    %c0_i32_1 = arith.constant 0 : i32
    return %c0_i32, %c0_i32_0 : i32, i32
  }
  func.func @transform_5(%arg0: i32) -> (i32, i32) {
    %c0_i32 = arith.constant 0 : i32
    %c0_i32_0 = arith.constant 0 : i32
    %c0_i32_1 = arith.constant 0 : i32
    return %c0_i32, %c0_i32_0 : i32, i32
  }
  func.func @transform_6(%arg0: i32) -> (i32, i32) {
    %c0_i32 = arith.constant 0 : i32
    %c0_i32_0 = arith.constant 0 : i32
    %c0_i32_1 = arith.constant 0 : i32
    return %c0_i32, %c0_i32_0 : i32, i32
  }
  func.func @transform_7(%arg0: i32) -> (i32, i32) {
    %c0_i32 = arith.constant 0 : i32
    %c0_i32_0 = arith.constant 0 : i32
    %c0_i32_1 = arith.constant 0 : i32
    return %c0_i32, %c0_i32_0 : i32, i32
  }
  func.func @transform_8(%arg0: i32) -> (i32, i32) {
    %c0_i32 = arith.constant 0 : i32
    %c0_i32_0 = arith.constant 0 : i32
    %c0_i32_1 = arith.constant 0 : i32
    return %c0_i32, %c0_i32_0 : i32, i32
  }
  func.func @transform_9(%arg0: i32) -> (i32, i32) {
    %c0_i32 = arith.constant 0 : i32
    %c0_i32_0 = arith.constant 0 : i32
    %c0_i32_1 = arith.constant 0 : i32
    return %c0_i32, %c0_i32_0 : i32, i32
  }
  func.func @transform_10(%arg0: i32) -> (i32, i32) {
    %c0_i32 = arith.constant 0 : i32
    %c0_i32_0 = arith.constant 0 : i32
    %c0_i32_1 = arith.constant 0 : i32
    return %c0_i32, %c0_i32_0 : i32, i32
  }
  func.func @transform_11(%arg0: i32) -> (i32, i32) {
    %c0_i32 = arith.constant 0 : i32
    %c0_i32_0 = arith.constant 0 : i32
    %c0_i32_1 = arith.constant 0 : i32
    return %c0_i32, %c0_i32_0 : i32, i32
  }
  func.func @transform_12(%arg0: i32) -> (i32, i32, i32) {
    %c0_i32 = arith.constant 0 : i32
    %c0_i32_0 = arith.constant 0 : i32
    %c0_i32_1 = arith.constant 0 : i32
    return %arg0, %c0_i32, %c0_i32_0 : i32, i32, i32
  }
}

</mosaic_0001>

<bundles_post_ra>
// kernel: cnn_to_rnn_forward.2
= control target key start
LH: loop header
LB: loop body
LE: loop exit
PB: predicated region body
PF: predicated region fallthrough
CT: control target
= control target key end

     0   :  { %13 = vsyncpa [#allocation4], 0  ;;  %s1408_s0 = inlined_call_operand.vmem [shape: f32[2,256,36], index: 0, kind: input, shape index: {}]   ;;  %s1409_s1 = inlined_call_operand.vmem [shape: f32[36,128], index: 1, kind: input, shape index: {}]   ;;  %s1410_s2 = inlined_call_operand.vmem [shape: f32[1,128], index: 2, kind: input, shape index: {}]   ;;  %s1411_s3 = inlined_call_operand.vmem [shape: f32[128,128], index: 3, kind: input, shape index: {}]   ;;  %s1412_s4 = inlined_call_operand.vmem [shape: f32[1,128], index: 4, kind: input, shape index: {}]   ;;  %s1413_s5 = inlined_call_operand.vmem [shape: f32[2,1,128], index: 5, kind: input, shape index: {}]   ;;  %s1414_s6 = inlined_call_operand.hbm [shape: f32[2,1,128], index: 6, kind: output, shape index: {0}]   ;;  %s1415_s7 = inlined_call_operand.vmem [shape: f32[2,1,128], index: 7, kind: output, shape index: {1}]  }
   0x1   :  { %15 = vsyncpa [#allocation4 + $0x1], 0  ;;  %s1139_s24 = smov 0   ;;  %s1141_s25 = smov 0  }
   0x2   :  { %s1143_s26 = smov 0   ;;  %s1145_s27 = smov 0  }
   0x3   :  { %s1147_s28 = smov 0   ;;  %s1149_s29 = smov 0  }
   0x4   :  { %s1151_s30 = smov 0   ;;  %s1153_s8 = smov 0  }
   0x5 LB: > { %1420 = sst [smem:[#allocation6_spill]] %s1070_s26  ;;  %s784_s9 = sadd.s32 4294967295, %s1090_s8   ;;  %s1090_s8 = sphi %s1153_s8, %s21_s8   ;;  %s1086_s30 = sphi %s1151_s30, %s1435_s30   ;;  %s1082_s29 = sphi %s1149_s29, %s1434_s29   ;;  %s1078_s28 = sphi %s1147_s28, %s1433_s28   ;;  %s1074_s27 = sphi %s1145_s27, %s1432_s27   ;;  %s1070_s26 = sphi %s1143_s26, %s1431_s26   ;;  %s1066_s25 = sphi %s1141_s25, %s1437_s25   ;;  %s1062_s24 = sphi %s1139_s24, %s1436_s24  }
   0x6   : > { %1421 = sst [smem:[#allocation7_spill]] %s1082_s29  ;;  %s785_s10 = sadd.s32 4294967294, %s1090_s8  }
   0x7   : > { %1422 = sst [smem:[#allocation8_spill]] %s1086_s30  ;;  %s30_s11 = sadd.s32 1, %s1082_s29 }
   0x8   : > { %p31_p0 = scmp.ge.s32.totalorder %s30_s11, 2  ;;  %s33_s12 = sadd.s32 1, %s1086_s30 }
   0x9   : > { %p188_p1 = scmp.ne.s32.totalorder %s1070_s26, %s1066_s25  ;;  %p189_p2 = scmp.eq.s32.totalorder %s784_s9, 3 }
   0xa   : > { %s1439_s11 = smov (%p31_p0, %s30_s11), 0  ;;  %s1441_s12 = smov (!%p31_p0, %s33_s12), %s1086_s30 }
   0xb   : > { %1423 = sst [smem:[#allocation9_spill]] %s1439_s11  ;;  %p1188_p3 = por %p189_p2, %p188_p1 }
   0xc   : > { %p194_p4 = scmp.ne.s32.totalorder %s1066_s25, %s1062_s24  ;;  %p35_p5 = scmp.ge.s32.totalorder %s1441_s12, 2 }
   0xd   : > { %p195_p6 = scmp.eq.s32.totalorder %s785_s10, 3  ;;  %p788_p7 = scmp.ge.s32.totalorder %s1090_s8, 1 }
   0xe   : > { %p270_p8 = scmp.lt.s32.totalorder %s1090_s8, 5  ;;  %s1443_s12 = smov (%p35_p5, %s1441_s12), 0 }
   0xf   : > { %1425 = sst [smem:[#allocation10_spill]] %s1443_s12  ;;  %p1198_p9 = por %p195_p6, %p194_p4 }
  0x10   : > { %p271_p10 = pnand %p788_p7, %p270_p8  ;;  %s175_s15 = ssub.s32 %s1086_s30, %s1443_s12 }
  0x11   : > { %s178_s16 = sadd.s32 1, %s1070_s26  ;;  %p176_p11 = scmp.eq.s32.totalorder %s175_s15, 0 }
  0x12   : > { %274 = sbr.rel (%p271_p10) target bundleno = 757 (0x2f5), region = 44  ;;  %s789_s19 = sshll.u32 (!%p271_p10), %s1074_s27, 4 }
  0x13   : > { %s1206_s17 = scalar_select %p176_p11, %s1070_s26, %s178_s16  }
  0x14   : > { %p312_p12 = scmp.lt.s32.totalorder (!%p271_p10), %s1078_s28, 1  ;;  %p314_p13 = scmp.lt.s32.totalorder (!%p271_p10), %s789_s19, 31 }
  0x15   : > { %1427 = sst [smem:[#allocation11_spill]] %s1206_s17  ;;  %s1428_s17 = sand.u32 (!%p271_p10), 1, %s1066_s25  }
  0x16   : > { %s1230_s26 = scalar_lea.vmem (!%p271_p10), [#allocation3], %s1428_s17  ;;  %p792_p0 = scmp.ne.s32.totalorder (!%p271_p10), %s1074_s27, 0 }
  0x17   : > { %s1212_s20 = scalar_select %p312_p12, %s1078_s28, 1 }
  0x18   : > { %s1445_s19 = smov (!%p314_p13, %s789_s19), 31  ;;  %331 = sbr.rel (%p792_p0) target bundleno = 31 (0x1f), region = 48 }
  0x19   : > { %s790_s21 = sshll.u32 %s1212_s20, 5  ;;  %s323_s9 = scalar_lea.vmem %s1413_s5, %s1212_s20 }
  0x1a   : > { %s317_s10 = sadd.s32 %s790_s21, %s1445_s19  ;;  %s326_s12 = scalar_lea.vmem %s1415_s7, %s1212_s20 }
  0x1b   : > { %s791_s18 = sshll.u32 %s317_s10, 3 }
  0x1c   : > { %s1226_s29 = scalar_lea.vmem %s1408_s0, %s791_s18 }
  0x1d   : > { %v1092_v0 = vmov 0.0  }
  0x1e   : > { %332 = vst [vmem:[#allocation2] sm:$0x1] %v1092_v0 }
  0x1f PF: > { %v361_v1 = vld [vmem:[%s1409_s1 + $0x20] sm:$0xf]  ;;  %vm397_vm0 = vcmask 1041408   ;;  %v359_v2 = vld [vmem:[%s1409_s1 + $0x10] sm:$0xff]  ;;  %v360_v3 = vld [vmem:[%s1409_s1 + $0x18] sm:$0xff]  ;;  %vm372_vm1 = vcmask 293888  }
  0x20   : > { %v364_v4 = vpack.c.bf16 %v361_v1, %v361_v1  ;;  %v363_v5 = vpack.c.bf16 %v360_v3, %v359_v2  ;;  %v333_v6 = vld [vmem:[%s1226_s29] sm:$0xff]  ;;  %v358_v8 = vld [vmem:[%s1409_s1 + $0x8] sm:$0xff]  ;;  %v335_v13 = vld [vmem:[%s1226_s29 + $0x10] sm:$0xff]  ;;  %v1093_v34 = vmov 0.0   ;;  %vm1094_vm2 = vmmov 0   ;;  %p802_p1 = scmp.ne.s32.totalorder %s1074_s27, 1 }
  0x21   : > { %v357_v7 = vld [vmem:[%s1409_s1] sm:$0xff]  ;;  %v334_v9 = vld [vmem:[%s1226_s29 + $0x8] sm:$0xff]  ;;  %v336_v14 = vld [vmem:[%s1226_s29 + $0x18] sm:$0xff]  ;;  %865 = vmatprep.subr.mxu1 %v1093_v34  ;;  %897 = vmatprep.mubr.msk.f32.mxu1 %vm1094_vm2, %v1093_v34 }
  0x22   : > { %920 = vmatprep.subr.msk.bf16.mxu0 %vm397_vm0, %v364_v4  ;;  %v399_v10 = vsel %vm397_vm0, %v364_v4, 0  ;;  %v349_v11 = vpack.c.bf16 %v334_v9, %v333_v6  ;;  %v362_v12 = vpack.c.bf16 %v358_v8, %v357_v7  ;;  %v337_v15 = vld [vmem:[%s1226_s29 + $0x20] sm:$0xff]  ;;  %v338_v16 = vld [vmem:[%s1226_s29 + $0x28] sm:$0xff]  ;;  %v350_v17 = vpack.c.bf16 %v336_v14, %v335_v13  ;;  %v339_v19 = vld [vmem:[%s1226_s29 + $0x30] sm:$0xff] }
  0x23   : > { %844 = vmatpush3.bf16.msra.mxu0 %v399_v10  ;;  %v351_v18 = vpack.c.bf16 %v338_v16, %v337_v15  ;;  %v340_v20 = vld [vmem:[%s1226_s29 + $0x38] sm:$0xff]  ;;  %v341_v21 = vld [vmem:[%s1226_s29 + $0x40] sm:$0xff]  ;;  %v342_v22 = vld [vmem:[%s1226_s29 + $0x48] sm:$0xff] }
  0x24   : > { %845 = vmatprep.subr.bf16.mxu0 %v363_v5  ;;  %849 = vmatprep.mubr.msk.bf16.mxu0 %vm372_vm1, %v349_v11  ;;  %v352_v23 = vpack.c.bf16 %v340_v20, %v339_v19  ;;  %v353_v24 = vpack.c.bf16 %v342_v22, %v341_v21  ;;  %v343_v25 = vld [vmem:[%s1226_s29 + $0x50] sm:$0xff]  ;;  %v344_v26 = vld [vmem:[%s1226_s29 + $0x58] sm:$0xff]  ;;  %v345_v27 = vld [vmem:[%s1226_s29 + $0x60] sm:$0xff]  ;;  %v1095_v20 = vmov 0.00390625  }
  0x25   : > { %v346_v28 = vld [vmem:[%s1226_s29 + $0x68] sm:$0xff]  ;;  %v354_v29 = vpack.c.bf16 %v344_v26, %v343_v25  ;;  %v347_v31 = vld [vmem:[%s1226_s29 + $0x70] sm:$0xff]  ;;  %v348_v32 = vld [vmem:[%s1226_s29 + $0x78] sm:$0xff] }
  0x26   : > { %v355_v30 = vpack.c.bf16 %v346_v28, %v345_v27  ;;  %v356_v33 = vpack.c.bf16 %v348_v32, %v347_v31  ;;  %v793_v49 = vld [vmem:[%s1410_s2] ss:$0 sm:$0xff] }
  0x27   : > { %846 = vmatpush3.bf16.msra.mxu0 %v363_v5  ;;  %v514_v21 = vld [vmem:[#allocation2] sm:$0x1] }
  0x28   : > { %847 = vmatprep.subr.bf16.mxu0 %v362_v12 }
  0x2b   : > { %848 = vmatpush3.bf16.msra.mxu0 %v362_v12 }
  0x2e   : > { %850 = vmatmul.mubr.msk.bf16.vlgmr.msra.gmra.mxu0 %vm372_vm1, %v350_v17 }
  0x2f   : > { %853 = vmatprep.mubr.msk.bf16.mxu0 %vm372_vm1, %v351_v18 }
  0x36   : > { %854 = vmatmul.mubr.msk.bf16.gmra.mxu0 %vm372_vm1, %v352_v23 }
  0x37   : > { %857 = vmatprep.mubr.msk.bf16.mxu0 %vm372_vm1, %v353_v24 }
  0x3e   : > { %858 = vmatmul.mubr.msk.bf16.gmra.mxu0 %vm372_vm1, %v354_v29 }
  0x3f   : > { %861 = vmatprep.mubr.msk.bf16.mxu0 %vm372_vm1, %v355_v30 }
  0x46   : > { %862 = vmatmul.mubr.msk.bf16.gmra.mxu0 %vm372_vm1, %v356_v33 }
  0xee   : > { %v851_v35 = vpop.f32.mrf.mxu0 }
  0xef   : > { %v444_v12 = vadd.f32 %v851_v35, %v793_v49 }
  0xf0   : > { %v1274_v36 = vpop.f32.mrf.mxu0 }
  0xf1   : > { %v500_v16 = vmax.f32 %v444_v12, 0.0  ;;  %v436_v17 = vadd.f32 %v793_v49, %v1274_v36 }
  0xf2   : > { %v852_v37 = vpop.f32.mrf.mxu0 }
  0xf3   : > { %v447_v10 = vadd.f32 %v852_v37, %v793_v49  ;;  %v498_v19 = vmax.f32 %v436_v17, 0.0 }
  0xf4   : > { %v1276_v38 = vpop.f32.mrf.mxu0 }
  0xf5   : > { %v501_v14 = vmax.f32 %v447_v10, 0.0  ;;  %v439_v15 = vadd.f32 %v793_v49, %v1276_v38 }
  0xf6   : > { %v855_v39 = vpop.f32.mrf.mxu0 }
  0xf7   : > { %v460_v4 = vadd.f32 %v855_v39, %v793_v49  ;;  %v499_v18 = vmax.f32 %v439_v15, 0.0 }
  0xf8   : > { %v451_v40 = vpop.f32.mrf.mxu0 }
  0xf9   : > { %v504_v8 = vmax.f32 %v460_v4, 0.0  ;;  %v452_v9 = vadd.f32 %v793_v49, %v451_v40 }
  0xfa   : > { %v856_v41 = vpop.f32.mrf.mxu0 }
  0xfb   : > { %v463_v2 = vadd.f32 %v856_v41, %v793_v49  ;;  %v502_v13 = vmax.f32 %v452_v9, 0.0 }
  0xfc   : > { %v454_v42 = vpop.f32.mrf.mxu0 }
  0xfd   : > { %v505_v6 = vmax.f32 %v463_v2, 0.0  ;;  %v455_v7 = vadd.f32 %v793_v49, %v454_v42 }
  0xfe   : > { %v859_v43 = vpop.f32.mrf.mxu0 }
  0xff   : > { %v476_v60 = vadd.f32 %v859_v43, %v793_v49  ;;  %v503_v11 = vmax.f32 %v455_v7, 0.0 }
 0x100   : > { %v467_v44 = vpop.f32.mrf.mxu0 }
 0x101   : > { %v508_v0 = vmax.f32 %v476_v60, 0.0  ;;  %v468_v1 = vadd.f32 %v793_v49, %v467_v44 }
 0x102   : > { %v860_v45 = vpop.f32.mrf.mxu0 }
 0x103   : > { %v479_v58 = vadd.f32 %v860_v45, %v793_v49  ;;  %v506_v5 = vmax.f32 %v468_v1, 0.0 }
 0x104   : > { %v470_v46 = vpop.f32.mrf.mxu0 }
 0x105   : > { %v509_v62 = vmax.f32 %v479_v58, 0.0  ;;  %v471_v63 = vadd.f32 %v793_v49, %v470_v46 }
 0x106   : > { %v863_v47 = vpop.f32.mrf.mxu0 }
 0x107   : > { %v492_v51 = vadd.f32 %v863_v47, %v793_v49  ;;  %v507_v3 = vmax.f32 %v471_v63, 0.0 }
 0x108   : > { %v483_v48 = vpop.f32.mrf.mxu0 }
 0x109   : > { %v512_v56 = vmax.f32 %v492_v51, 0.0  ;;  %v484_v57 = vadd.f32 %v793_v49, %v483_v48 }
 0x10a   : > { %v864_v50 = vpop.f32.mrf.mxu0 }
 0x10b   : > { %v495_v52 = vadd.f32 %v864_v50, %v793_v49  ;;  %v510_v61 = vmax.f32 %v484_v57, 0.0 }
 0x10c   : > { %v486_v53 = vpop.f32.mrf.mxu0 }
 0x10d   : > { %v513_v54 = vmax.f32 %v495_v52, 0.0  ;;  %v487_v55 = vadd.f32 %v793_v49, %v486_v53 }
 0x10f   : > { %866 = vmatpush3.msra.mxu1 %v513_v54  ;;  %v511_v59 = vmax.f32 %v487_v55, 0.0 }
 0x110   : > { %867 = vmatprep.subr.mxu1 %v1093_v34 }
 0x111   : > { %868 = vmatpush3.msra.mxu1 %v512_v56 }
 0x112   : > { %869 = vmatprep.subr.mxu1 %v1093_v34 }
 0x113   : > { %870 = vmatpush3.msra.mxu1 %v511_v59 }
 0x114   : > { %871 = vmatprep.subr.mxu1 %v1093_v34 }
 0x115   : > { %872 = vmatpush3.msra.mxu1 %v510_v61 }
 0x116   : > { %873 = vmatprep.subr.mxu1 %v1093_v34 }
 0x117   : > { %874 = vmatpush3.msra.mxu1 %v509_v62 }
 0x118   : > { %875 = vmatprep.subr.mxu1 %v1093_v34 }
 0x119   : > { %876 = vmatpush3.msra.mxu1 %v508_v0 }
 0x11a   : > { %877 = vmatprep.subr.mxu1 %v1093_v34 }
 0x11b   : > { %878 = vmatpush3.msra.mxu1 %v507_v3 }
 0x11c   : > { %879 = vmatprep.subr.mxu1 %v1093_v34 }
 0x11d   : > { %880 = vmatpush3.msra.mxu1 %v506_v5 }
 0x11e   : > { %881 = vmatprep.subr.mxu1 %v1093_v34 }
 0x11f   : > { %882 = vmatpush3.msra.mxu1 %v505_v6 }
 0x120   : > { %883 = vmatprep.subr.mxu1 %v1093_v34 }
 0x121   : > { %884 = vmatpush3.msra.mxu1 %v504_v8 }
 0x122   : > { %885 = vmatprep.subr.mxu1 %v1093_v34 }
 0x123   : > { %886 = vmatpush3.msra.mxu1 %v503_v11 }
 0x124   : > { %887 = vmatprep.subr.mxu1 %v1093_v34 }
 0x125   : > { %888 = vmatpush3.msra.mxu1 %v502_v13 }
 0x126   : > { %889 = vmatprep.subr.mxu1 %v1093_v34 }
 0x127   : > { %890 = vmatpush3.msra.mxu1 %v501_v14 }
 0x128   : > { %891 = vmatprep.subr.mxu1 %v1093_v34 }
 0x129   : > { %892 = vmatpush3.msra.mxu1 %v500_v16 }
 0x12a   : > { %893 = vmatprep.subr.mxu1 %v1093_v34 }
 0x12b   : > { %894 = vmatpush3.msra.mxu1 %v499_v18 }
 0x12c   : > { %895 = vmatprep.subr.mxu1 %v1093_v34 }
 0x12d   : > { %896 = vmatpush3.msra.mxu1 %v498_v19 }
 0x12e   : > { %898 = vmatmul.mubr.f32.vlgmr.msra.gmra.mxu1 %v1095_v20 }
 0x1ed   : > { %590 = sbr.rel (%p802_p1) target bundleno = 733 (0x2dd), region = 52 }
 0x1ee   : > { %v581_v22 = vpop.f32.mrf.mxu1 }
 0x1ef   : > { %v585_v23 = vadd.f32 %v581_v22, %v514_v21 }
 0x1f0   : > { %v899_v24 = vpop.f32.mrf.mxu1 }
 0x1f1   : > { %586 = vst [vmem:[#allocation2] sm:$0x1] %v585_v23 }
 0x1f2   : > { %v608_v25 = vld [vmem:[%s1411_s3 + $0x70] sm:$0xff]  ;;  %v609_v26 = vld [vmem:[%s1411_s3 + $0x78] sm:$0xff]  ;;  %v606_v27 = vld [vmem:[%s1411_s3 + $0x60] sm:$0xff]  ;;  %v1096_v28 = vmov 0.0   ;;  %vm1097_vm3 = vmmov 0  }
 0x1f3   : > { %900 = vmatprep.subr.bf16.mxu0 %v1096_v28  ;;  %v617_v29 = vpack.c.bf16 %v609_v26, %v608_v25  ;;  %v607_v30 = vld [vmem:[%s1411_s3 + $0x68] sm:$0xff]  ;;  %916 = vmatprep.mubr.msk.bf16.mxu0 %vm1097_vm3, %v1096_v28  ;;  %v604_v32 = vld [vmem:[%s1411_s3 + $0x50] sm:$0xff]  ;;  %v605_v33 = vld [vmem:[%s1411_s3 + $0x58] sm:$0xff] }
 0x1f4   : > { %v616_v31 = vpack.c.bf16 %v607_v30, %v606_v27  ;;  %v615_v35 = vpack.c.bf16 %v605_v33, %v604_v32  ;;  %v602_v36 = vld [vmem:[%s1411_s3 + $0x40] sm:$0xff]  ;;  %v603_v37 = vld [vmem:[%s1411_s3 + $0x48] sm:$0xff]  ;;  %v600_v39 = vld [vmem:[%s1411_s3 + $0x30] sm:$0xff] }
 0x1f5   : > { %901 = vmatpush3.bf16.msra.mxu0 %v617_v29  ;;  %v614_v38 = vpack.c.bf16 %v603_v37, %v602_v36  ;;  %v601_v40 = vld [vmem:[%s1411_s3 + $0x38] sm:$0xff]  ;;  %v598_v42 = vld [vmem:[%s1411_s3 + $0x20] sm:$0xff]  ;;  %v599_v43 = vld [vmem:[%s1411_s3 + $0x28] sm:$0xff] }
 0x1f6   : > { %902 = vmatprep.subr.bf16.mxu0 %v1096_v28  ;;  %v613_v41 = vpack.c.bf16 %v601_v40, %v600_v39  ;;  %v612_v44 = vpack.c.bf16 %v599_v43, %v598_v42  ;;  %v596_v45 = vld [vmem:[%s1411_s3 + $0x10] sm:$0xff]  ;;  %v597_v46 = vld [vmem:[%s1411_s3 + $0x18] sm:$0xff]  ;;  %v594_v48 = vld [vmem:[%s1411_s3] sm:$0xff] }
 0x1f7   : > { %v611_v47 = vpack.c.bf16 %v597_v46, %v596_v45  ;;  %v595_v49 = vld [vmem:[%s1411_s3 + $0x8] sm:$0xff]  ;;  %v618_v52 = vld [vmem:[%s1412_s4] sm:$0x1] }
 0x1f8   : > { %v591_v34 = vld [vmem:[#allocation2] sm:$0x1]  ;;  %v610_v50 = vpack.c.bf16 %v595_v49, %v594_v48 }
 0x1f9   : > { %592 = vst [vmem:[%s1230_s26] sm:$0x1] %v591_v34  ;;  %903 = vmatpush3.bf16.msra.mxu0 %v616_v31  ;;  %v593_v51 = vpack.c.bf16 %v591_v34, %v591_v34  ;;  %v660_v55 = vld [vmem:[%s323_s9] sm:$0x1] }
 0x1fa   : > { %904 = vmatprep.subr.bf16.mxu0 %v1096_v28  ;;  %vm661_vm4 = vcmp.lt.f32.partialorder %v660_v55, 0.5 }
 0x1fd   : > { %905 = vmatpush3.bf16.msra.mxu0 %v615_v35 }
 0x1fe   : > { %906 = vmatprep.subr.bf16.mxu0 %v1096_v28 }
 0x201   : > { %907 = vmatpush3.bf16.msra.mxu0 %v614_v38 }
 0x202   : > { %908 = vmatprep.subr.bf16.mxu0 %v1096_v28 }
 0x205   : > { %909 = vmatpush3.bf16.msra.mxu0 %v613_v41 }
 0x206   : > { %910 = vmatprep.subr.bf16.mxu0 %v1096_v28 }
 0x209   : > { %911 = vmatpush3.bf16.msra.mxu0 %v612_v44 }
 0x20a   : > { %912 = vmatprep.subr.bf16.mxu0 %v1096_v28 }
 0x20d   : > { %913 = vmatpush3.bf16.msra.mxu0 %v611_v47 }
 0x20e   : > { %914 = vmatprep.subr.bf16.mxu0 %v1096_v28 }
 0x211   : > { %915 = vmatpush3.bf16.msra.mxu0 %v610_v50 }
 0x214   : > { %917 = vmatmul.mubr.bf16.vlgmr.msra.gmra.mxu0 %v593_v51 }
 0x2d4   : > { %v653_v53 = vpop.f32.mrf.mxu0 }
 0x2d5   : > { %v654_v54 = vadd.f32 %v653_v53, %v618_v52 }
 0x2d6   : > { %v918_v56 = vpop.f32.mrf.mxu0 }
 0x2d7   : > { %v659_v57 = vmax.f32 %v654_v54, 0.0 }
 0x2d8   : > { %v656_v58 = vpop.f32.mrf.mxu0 }
 0x2d9   : > { %v662_v59 = vmul.f32 2.0, %v659_v57 }
 0x2da   : > { %v919_v60 = vpop.f32.mrf.mxu0 }
 0x2db   : > { %v663_v61 = vsel %vm661_vm4, %v662_v59, 0.0 }
 0x2dc   : > { %664 = vst [vmem:[%s326_s12] sm:$0x1] %v663_v61 }
 0x2dd PF: > { %s803_s16 = sshll.u32 %s1078_s28, 4  ;;  %s681_s22 = sshll.u32 %s1230_s26, 4  ;;  %s682_s22 = int_to_ptr.vmem [resolvable:$true] %s681_s22 }
 0x2de   : > { %s679_s21 = scalar_lea.hbm %s1414_s6, %s803_s16  ;;  %s1429_s30 = sand.u32 1, %s1066_s25  }
 0x2df   : > { %s666_s11 = scalar_lea.sflag [#allocation4], %s1429_s30  ;;  %s998_s17 = scalar_lea.vmem %s682_s22, 16 }
 0x2e0   : > { %p999_p2 = scmp.ne.s32.totalorder %s682_s22, %s998_s17  ;;  %s1098_s12 = smov [#allocation3]  }
 0x2e1   : > { %s1002_s20 = sshll.u32 %s1098_s12, 4  ;;  %s1003_s20 = int_to_ptr.vmem [resolvable:$false] %s1002_s20 }
 0x2e2   : > { %p1000_p4 = pnand %p999_p2, %p1188_p3  ;;  %s1004_s18 = scalar_lea.vmem %s1003_s20, 32 }
 0x2e3   : > { %p1005_p6 = scmp.lt.s32.totalorder %s682_s22, %s1003_s20  ;;  %p1006_p7 = scmp.lt.s32.totalorder %s1004_s18, %s998_s17 }
 0x2e4   : > { %p1001_p5 = pneg %p1000_p4 }
 0x2e5   : > { %p1007_p8 = por %p1006_p7, %p1005_p6 }
 0x2e7   : > { %p1008_p10 = pnand %p1007_p8, %p1001_p5 }
 0x2e9   : > { %1011 = shalt.err (!%p1008_p10)
}
 0x2ea   : > { %s1012_s28 = scalar_lea.hbm %s679_s21, 16  ;;  %s1016_s27 = scalar_lea.hbm %s1414_s6, 32 }
 0x2eb   : > { %p1013_p11 = scmp.ne.s32.totalorder %s679_s21, %s1012_s28  ;;  %p1017_p0 = scmp.lt.s32.totalorder %s679_s21, %s1414_s6 }
 0x2ec   : > { %p1018_p1 = scmp.lt.s32.totalorder %s1016_s27, %s1012_s28 }
 0x2ed   : > { %p1014_p12 = pnand %p1013_p11, %p1188_p3 }
 0x2ee   : > { %p1019_p2 = por %p1018_p1, %p1017_p0 }
 0x2ef   : > { %p1015_p13 = pneg %p1014_p12 }
 0x2f1   : > { %p1020_p4 = pnand %p1019_p2, %p1015_p13 }
 0x2f3   : > { %1023 = shalt.err (!%p1020_p4)
}
 0x2f4   : > { %921 = dma.vmem_to_hbm [thread:$0]  (%p1188_p3), %s682_s22, 16, %s679_s21, %s666_s11  }
 0x2f5 PF: > { %p927_p5 = scmp.ge.s32.totalorder %s1090_s8, 2  ;;  %s696_s29 = sand.u32 1, %s1062_s24  }
 0x2f6   : > { %s697_s16 = scalar_lea.sflag [#allocation4], %s696_s29 }
 0x2f7   : > { %p924_p6 = pnand %p927_p5, %p1198_p9 }
 0x2f9   : > { %p925_p7 = pneg %p924_p6 }
 0x2fb   : > { %1057 = dma.done.wait (%p925_p7), %s697_s16, 16  }
 0x2fc   : > { %1059 = vsyncadd (%p925_p7), %s697_s16, 4294967280  ;;  %s21_s8 = sadd.s32 1, %s1090_s8   ;;  %s1430_s19 = sld [smem:[#allocation6_spill]] }
 0x2fd   : > { %p18_p8 = scmp.ge.s32.totalorder %s21_s8, 6   ;;  %s1431_s26 = sld [smem:[#allocation11_spill]] }
 0x2fe   : > { %s1432_s27 = sld [smem:[#allocation7_spill]]  ;;  %s1436_s24 = smov %s1066_s25 }
 0x2ff   : > { %s1433_s28 = sld [smem:[#allocation8_spill]]  ;;  %20 = sbr.rel (!%p18_p8) target bundleno = 5 (0x5), region = 102 }
 0x300   : > { %s1434_s29 = sld [smem:[#allocation9_spill]] }
 0x301   : > { %s1435_s30 = sld [smem:[#allocation10_spill]] }
 0x302   : > { %s1437_s25 = smov %s1430_s19 }
 0x304   :  { %707 = vsyncpa [#allocation4], 1 }
 0x305   :  { %709 = vsyncpa [#allocation4 + $0x1], 1 }

// kernel: cnn_to_rnn_forward.3
= control target key start
LH: loop header
LB: loop body
LE: loop exit
PB: predicated region body
PF: predicated region fallthrough
CT: control target
= control target key end

     0   :  { %s2978_s0 = inlined_call_operand.vmem [shape: f32[2,128], index: 0, kind: input, shape index: {}]   ;;  %s2979_s1 = inlined_call_operand.vmem [shape: f32[9,2,256], index: 1, kind: input, shape index: {}]   ;;  %s2980_s2 = inlined_call_operand.vmem [shape: f32[9,2,128], index: 2, kind: input, shape index: {}]   ;;  %s2981_s3 = inlined_call_operand.vmem [shape: f32[256,128], index: 3, kind: input, shape index: {}]   ;;  %s2982_s4 = inlined_call_operand.vmem [shape: f32[128,512], index: 4, kind: input, shape index: {}]   ;;  %s2983_s5 = inlined_call_operand.vmem [shape: f32[128,512], index: 5, kind: input, shape index: {}]   ;;  %s2984_s6 = inlined_call_operand.vmem [shape: f32[1,512], index: 6, kind: input, shape index: {}]   ;;  %s2985_s7 = inlined_call_operand.vmem [shape: f32[128,512], index: 7, kind: input, shape index: {}]   ;;  %s2986_s8 = inlined_call_operand.vmem [shape: f32[128,512], index: 8, kind: input, shape index: {}]   ;;  %s2987_s9 = inlined_call_operand.vmem [shape: f32[1,512], index: 9, kind: input, shape index: {}]   ;;  %s2988_s10 = inlined_call_operand.vmem [shape: f32[128,256], index: 10, kind: input, shape index: {}]   ;;  %s2989_s11 = inlined_call_operand.vmem [shape: f32[1,256], index: 11, kind: input, shape index: {}]   ;;  %s2990_s12 = inlined_call_operand.hbm [shape: f32[9,2,256], index: 12, kind: output, shape index: {}]  }
   0x1   :  { %2995 = sst [smem:[#allocation10_spill]] %s2979_s1 }
   0x2   :  { %2996 = sst [smem:[#allocation11_spill]] %s2980_s2 }
   0x3   :  { %17 = vsyncpa [#allocation5], 0 }
   0x4   :  { %19 = vsyncpa [#allocation5 + $0x1], 0  ;;  %s1822_s21 = smov 0   ;;  %s1824_s22 = smov 0  }
   0x5   :  { %s1826_s23 = smov 0   ;;  %s1828_s24 = smov 0  }
   0x6 LB: > { %2997 = sst [smem:[#allocation7_spill]] %s1748_s23  ;;  %s1843_s25 = sadd.s32 4294967295, %s1752_s24   ;;  %s1752_s24 = sphi %s1828_s24, %s3007_s24   ;;  %s1748_s23 = sphi %s1826_s23, %s3012_s23   ;;  %s1744_s22 = sphi %s1824_s22, %s3011_s22   ;;  %s1740_s21 = sphi %s1822_s21, %s3010_s21  }
   0x7   : > { %s1579_s26 = sadd.s32 4294967294, %s1752_s24   ;;  %s1847_s27 = sadd.s32 1, %s1752_s24  }
   0x8   : > { %2998 = sst [smem:[#allocation8_spill]] %s1847_s27  ;;  %s294_s28 = sadd.s32 1, %s1748_s23 }
   0x9   : > { %s291_s29 = ssub.s32 %s1752_s24, %s1847_s27  ;;  %p304_p0 = scmp.ne.s32.totalorder %s1748_s23, %s1744_s22 }
   0xa   : > { %p292_p1 = scmp.eq.s32.totalorder %s291_s29, 0  ;;  %p305_p2 = scmp.eq.s32.totalorder %s1843_s25, 8 }
   0xb   : > { %p310_p3 = scmp.ne.s32.totalorder %s1744_s22, %s1740_s21  ;;  %p311_p4 = scmp.eq.s32.totalorder %s1579_s26, 8 }
   0xc   : > { %s1858_s30 = scalar_select %p292_p1, %s1748_s23, %s294_s28  }
   0xd   : > { %p1860_p5 = por %p305_p2, %p304_p0  ;;  %p1864_p6 = por %p311_p4, %p310_p3 }
   0xe   : > { %2999 = sst [smem:[#allocation9_spill]] %s1858_s30  ;;  %p1582_p7 = scmp.ge.s32.totalorder %s1752_s24, 1 }
   0xf   : > { %p374_p8 = scmp.lt.s32.totalorder %s1752_s24, 10 }
  0x11   : > { %p375_p9 = pnand %p1582_p7, %p374_p8 }
  0x12   : > { %s2994_s15 = sand.u32 (!%p375_p9), 1, %s1744_s22   ;;  %p420_p10 = scmp.lt.s32.totalorder (!%p375_p9), %s1843_s25, 8 }
  0x13   : > { %378 = sbr.rel (%p375_p9) target bundleno = 996 (0x3e4), region = 68  ;;  %s1874_s16 = sshll.u32 (!%p375_p9), %s2994_s15, 2 }
  0x14   : > { %p430_p11 = scmp.eq.s32.totalorder (!%p375_p9), %s1843_s25, 0  ;;  %s3002_s1 = sld [smem:[#allocation10_spill]] (!%p375_p9) }
  0x15   : > { %s3003_s2 = sld [smem:[#allocation11_spill]] (!%p375_p9)  ;;  %p1587_p12 = scmp.ne.s32.totalorder (!%p375_p9), %s1843_s25, 0 }
  0x18   : > { %s421_s17 = scalar_select %p420_p10, %s1843_s25, 8 }
  0x19   : > { %433 = sbr.rel (%p1587_p12) target bundleno = 33 (0x21), region = 72 }
  0x1a   : > { %s1595_s18 = sshll.u32 %s421_s17, 2  ;;  %s1586_s19 = sshll.u32 %s421_s17, 1 }
  0x1b   : > { %s1881_s28 = scalar_lea.vmem %s3002_s1, %s1595_s18  ;;  %s1886_s23 = scalar_lea.vmem %s3003_s2, %s1586_s19 }
  0x1e   : > { %v1754_v0 = vmov 0.0  }
  0x1f   : > { %434 = vst [vmem:[#allocation2] sm:$0x3] %v1754_v0  ;;  %435 = vst [vmem:[#allocation2 + $0x2] sm:$0x3] %v1754_v0 }
  0x20   : > { %436 = vst [vmem:[#allocation3] sm:$0x3] %v1754_v0  ;;  %437 = vst [vmem:[#allocation3 + $0x2] sm:$0x3] %v1754_v0 }
  0x21 PF: > { %v482_v1 = vld [vmem:[%s2981_s3 + $0xf0] sm:$0xff]  ;;  %v483_v2 = vld [vmem:[%s2981_s3 + $0xf8] sm:$0xff]  ;;  %v480_v6 = vld [vmem:[%s2981_s3 + $0xe0] sm:$0xff]  ;;  %v1755_v8 = vmov 0   ;;  %s544_s2 = scalar_select %p430_p11, 1, 0 }
  0x22   : > { %v466_v3 = vld [vmem:[%s2981_s3 + $0x70] sm:$0xff]  ;;  %v499_v4 = vpack.c.bf16 %v483_v2, %v482_v1  ;;  %v467_v5 = vld [vmem:[%s2981_s3 + $0x78] sm:$0xff]  ;;  %v481_v7 = vld [vmem:[%s2981_s3 + $0xe8] sm:$0xff]  ;;  %782 = vmatprep.mubr.bf16.mxu1 %v1755_v8  ;;  %s1596_s19 = sshll.u32 %s1843_s25, 6  ;;  %s3004_s1 = scalar_lea.vmem [#allocation4], %s1874_s16 }
  0x23   : > { %v491_v9 = vpack.c.bf16 %v467_v5, %v466_v3  ;;  %v498_v10 = vpack.c.bf16 %v481_v7, %v480_v6  ;;  %v464_v11 = vld [vmem:[%s2981_s3 + $0x60] sm:$0xff]  ;;  %v465_v12 = vld [vmem:[%s2981_s3 + $0x68] sm:$0xff]  ;;  %v478_v13 = vld [vmem:[%s2981_s3 + $0xd0] sm:$0xff]  ;;  %s545_s27 = scvt.s32.f32 %s544_s2  ;;  %s1508_s2 = sshll.u32 %s3004_s1, 4  ;;  %s1509_s2 = int_to_ptr.vmem [resolvable:$true] %s1508_s2 }
  0x24   : > { %1597 = vmatprep.subr.bf16.mxu0 %v499_v4  ;;  %v479_v14 = vld [vmem:[%s2981_s3 + $0xd8] sm:$0xff]  ;;  %v490_v15 = vpack.c.bf16 %v465_v12, %v464_v11  ;;  %v462_v17 = vld [vmem:[%s2981_s3 + $0x50] sm:$0xff]  ;;  %v476_v19 = vld [vmem:[%s2981_s3 + $0xc0] sm:$0xff]  ;;  %s2939_s29 = scalar_lea.hbm %s2990_s12, %s1596_s19  ;;  %s3006_s15 = sand.u32 1, %s1744_s22  }
  0x25   : > { %1598 = vmatpush3.bf16.msra.mxu0 %v491_v9  ;;  %v497_v16 = vpack.c.bf16 %v479_v14, %v478_v13  ;;  %v463_v18 = vld [vmem:[%s2981_s3 + $0x58] sm:$0xff]  ;;  %v477_v20 = vld [vmem:[%s2981_s3 + $0xc8] sm:$0xff]  ;;  %v460_v23 = vld [vmem:[%s2981_s3 + $0x40] sm:$0xff]  ;;  %s549_s26 = ssub.f32 1.0, %s545_s27  ;;  %s1494_s17 = scalar_lea.sflag [#allocation5], %s3006_s15 }
  0x26   : > { %1599 = vmatprep.subr.bf16.mxu0 %v498_v10  ;;  %v489_v21 = vpack.c.bf16 %v463_v18, %v462_v17  ;;  %v496_v22 = vpack.c.bf16 %v477_v20, %v476_v19  ;;  %v461_v24 = vld [vmem:[%s2981_s3 + $0x48] sm:$0xff]  ;;  %v474_v25 = vld [vmem:[%s2981_s3 + $0xb0] sm:$0xff]  ;;  %v475_v26 = vld [vmem:[%s2981_s3 + $0xb8] sm:$0xff]  ;;  %s1756_s25 = smov [#allocation4]  }
  0x27   : > { %v1946_v27 = vld.sshfl [vmem:[%s1881_s28] sm:$0x33 pattern:$0x76325410]  ;;  %v458_v28 = vld [vmem:[%s2981_s3 + $0x30] sm:$0xff]  ;;  %v706_v30 = vld [vmem:[%s2983_s5 + $0x1c8] sm:$0xff]  ;;  %v488_v33 = vpack.c.bf16 %v461_v24, %v460_v23  ;;  %v495_v38 = vpack.c.bf16 %v475_v26, %v474_v25  ;;  %s3005_s28 = smov %s3004_s1 }
  0x28   : > { %v447_v29 = vcombine.high %v1946_v27, %v1946_v27  ;;  %v710_v31 = vld [vmem:[%s2983_s5 + $0x1e8] sm:$0xff]  ;;  %v705_v32 = vld [vmem:[%s2983_s5 + $0x1c0] sm:$0xff]  ;;  %v459_v39 = vld [vmem:[%s2981_s3 + $0x38] sm:$0xff]  ;;  %s1696_s18 = sshll.u32 %s1756_s25, 4  ;;  %s1697_s18 = int_to_ptr.vmem [resolvable:$false] %s1696_s18 }
  0x29   : > { %1600 = vmatpush3.bf16.msra.mxu0 %v490_v15  ;;  %v742_v34 = vpack.c.bf16 %v710_v31, %v706_v30  ;;  %v709_v35 = vld [vmem:[%s2983_s5 + $0x1e0] sm:$0xff]  ;;  %v698_v36 = vld [vmem:[%s2983_s5 + $0x188] sm:$0xff]  ;;  %v487_v50 = vpack.c.bf16 %v459_v39, %v458_v28  ;;  %v470_v58 = vld [vmem:[%s2981_s3 + $0x90] sm:$0xff]  ;;  %s1698_s20 = scalar_lea.vmem %s1697_s18, 128  ;;  %p1699_p2 = scmp.lt.s32.totalorder %s1509_s2, %s1697_s18 }
  0x2a   : > { %1601 = vmatprep.subr.bf16.mxu0 %v497_v16  ;;  %v702_v37 = vld [vmem:[%s2983_s5 + $0x1a8] sm:$0xff]  ;;  %v451_v40 = vpack.c.bf16 %v447_v29, %v447_v29  ;;  %v741_v41 = vpack.c.bf16 %v709_v35, %v705_v32  ;;  %v697_v43 = vld [vmem:[%s2983_s5 + $0x180] sm:$0xff]  ;;  %v471_v59 = vld [vmem:[%s2981_s3 + $0x98] sm:$0xff]  ;;  %v450_v35 = vpack.c.bf16 %v1946_v27, %v1946_v27 }
  0x2b   : > { %v738_v42 = vpack.c.bf16 %v702_v37, %v698_v36  ;;  %v701_v44 = vld [vmem:[%s2983_s5 + $0x1a0] sm:$0xff]  ;;  %v473_v46 = vld [vmem:[%s2981_s3 + $0xa8] sm:$0xff]  ;;  %750 = vmatprep.subr.bf16.mxu1 %v742_v34  ;;  %v454_v63 = vld [vmem:[%s2981_s3 + $0x10] sm:$0xff]  ;;  %v493_v3 = vpack.c.bf16 %v471_v59, %v470_v58 }
  0x2c   : > { %v472_v45 = vld [vmem:[%s2981_s3 + $0xa0] sm:$0xff]  ;;  %532 = vmatprep.mubr.bf16.mxu0 %v451_v40  ;;  %751 = vmatpush1.bf16.msra.mxu1 %v741_v41  ;;  %v737_v47 = vpack.c.bf16 %v701_v44, %v697_v43  ;;  %v690_v48 = vld [vmem:[%s2983_s5 + $0x148] sm:$0xff]  ;;  %v455_v4 = vld [vmem:[%s2981_s3 + $0x18] sm:$0xff] }
  0x2d   : > { %1602 = vmatpush3.bf16.msra.mxu0 %v489_v21  ;;  %v694_v49 = vld [vmem:[%s2983_s5 + $0x168] sm:$0xff]  ;;  %752 = vmatprep.subr.bf16.mxu1 %v738_v42  ;;  %v689_v52 = vld [vmem:[%s2983_s5 + $0x140] sm:$0xff]  ;;  %v494_v54 = vpack.c.bf16 %v473_v46, %v472_v45  ;;  %v485_v11 = vpack.c.bf16 %v455_v4, %v454_v63  ;;  %v708_v20 = vld [vmem:[%s2983_s5 + $0x1d8] sm:$0xff] }
  0x2e   : > { %1603 = vmatprep.subr.bf16.mxu0 %v496_v22  ;;  %v734_v51 = vpack.c.bf16 %v694_v49, %v690_v48  ;;  %v693_v53 = vld [vmem:[%s2983_s5 + $0x160] sm:$0xff]  ;;  %v457_v56 = vld [vmem:[%s2981_s3 + $0x28] sm:$0xff]  ;;  %v712_v21 = vld [vmem:[%s2983_s5 + $0x1f8] sm:$0xff] }
  0x2f   : > { %v456_v55 = vld [vmem:[%s2981_s3 + $0x20] sm:$0xff]  ;;  %v682_v57 = vld [vmem:[%s2983_s5 + $0x108] sm:$0xff]  ;;  %v733_v61 = vpack.c.bf16 %v693_v53, %v689_v52  ;;  %v707_v24 = vld [vmem:[%s2983_s5 + $0x1d0] sm:$0xff]  ;;  %v744_v29 = vpack.c.bf16 %v712_v21, %v708_v20 }
  0x30   : > { %v686_v60 = vld [vmem:[%s2983_s5 + $0x128] sm:$0xff]  ;;  %753 = vmatpush1.bf16.msra.mxu1 %v737_v47  ;;  %v486_v62 = vpack.c.bf16 %v457_v56, %v456_v55  ;;  %v681_v1 = vld [vmem:[%s2983_s5 + $0x100] sm:$0xff]  ;;  %v711_v30 = vld [vmem:[%s2983_s5 + $0x1f0] sm:$0xff] }
  0x31   : > { %1604 = vmatpush3.bf16.msra.mxu0 %v488_v33  ;;  %754 = vmatprep.subr.bf16.mxu1 %v734_v51  ;;  %v730_v0 = vpack.c.bf16 %v686_v60, %v682_v57  ;;  %v685_v2 = vld [vmem:[%s2983_s5 + $0x120] sm:$0xff]  ;;  %v674_v5 = vld [vmem:[%s2983_s5 + $0xc8] sm:$0xff]  ;;  %v700_v33 = vld [vmem:[%s2983_s5 + $0x198] sm:$0xff]  ;;  %v743_v37 = vpack.c.bf16 %v711_v30, %v707_v24 }
  0x32   : > { %1605 = vmatprep.subr.bf16.mxu0 %v495_v38  ;;  %v678_v6 = vld [vmem:[%s2983_s5 + $0xe8] sm:$0xff]  ;;  %v468_v7 = vld [vmem:[%s2981_s3 + $0x80] sm:$0xff]  ;;  %v729_v10 = vpack.c.bf16 %v685_v2, %v681_v1  ;;  %v704_v34 = vld [vmem:[%s2983_s5 + $0x1b8] sm:$0xff] }
  0x33   : > { %v469_v9 = vld [vmem:[%s2981_s3 + $0x88] sm:$0xff]  ;;  %v452_v12 = vld [vmem:[%s2981_s3] sm:$0xff]  ;;  %v726_v13 = vpack.c.bf16 %v678_v6, %v674_v5  ;;  %v699_v38 = vld [vmem:[%s2983_s5 + $0x190] sm:$0xff]  ;;  %v740_v27 = vpack.c.bf16 %v704_v34, %v700_v33 }
  0x34   : > { %755 = vmatpush1.bf16.msra.mxu1 %v733_v61  ;;  %v673_v14 = vld [vmem:[%s2983_s5 + $0xc0] sm:$0xff]  ;;  %v492_v16 = vpack.c.bf16 %v469_v9, %v468_v7  ;;  %v453_v17 = vld [vmem:[%s2981_s3 + $0x8] sm:$0xff]  ;;  %v703_v42 = vld [vmem:[%s2983_s5 + $0x1b0] sm:$0xff] }
  0x35   : > { %1606 = vmatpush3.bf16.msra.mxu0 %v487_v50  ;;  %756 = vmatprep.subr.bf16.mxu1 %v730_v0  ;;  %v677_v15 = vld [vmem:[%s2983_s5 + $0xe0] sm:$0xff]  ;;  %v666_v18 = vld [vmem:[%s2983_s5 + $0x88] sm:$0xff]  ;;  %v484_v23 = vpack.c.bf16 %v453_v17, %v452_v12  ;;  %v692_v45 = vld [vmem:[%s2983_s5 + $0x158] sm:$0xff]  ;;  %v739_v48 = vpack.c.bf16 %v703_v42, %v699_v38 }
  0x36   : > { %1607 = vmatprep.subr.bf16.mxu0 %v494_v54  ;;  %v670_v19 = vld [vmem:[%s2983_s5 + $0xa8] sm:$0xff]  ;;  %v725_v22 = vpack.c.bf16 %v677_v15, %v673_v14  ;;  %v665_v26 = vld [vmem:[%s2983_s5 + $0x80] sm:$0xff]  ;;  %v696_v46 = vld [vmem:[%s2983_s5 + $0x178] sm:$0xff] }
  0x37   : > { %v722_v25 = vpack.c.bf16 %v670_v19, %v666_v18  ;;  %v669_v28 = vld [vmem:[%s2983_s5 + $0xa0] sm:$0xff]  ;;  %v658_v31 = vld [vmem:[%s2983_s5 + $0x48] sm:$0xff]  ;;  %v691_v49 = vld [vmem:[%s2983_s5 + $0x150] sm:$0xff]  ;;  %v736_v53 = vpack.c.bf16 %v696_v46, %v692_v45 }
  0x38   : > { %757 = vmatpush1.bf16.msra.mxu1 %v729_v10  ;;  %v662_v32 = vld [vmem:[%s2983_s5 + $0x68] sm:$0xff]  ;;  %v721_v36 = vpack.c.bf16 %v669_v28, %v665_v26  ;;  %v657_v40 = vld [vmem:[%s2983_s5 + $0x40] sm:$0xff]  ;;  %v695_v54 = vld [vmem:[%s2983_s5 + $0x170] sm:$0xff] }
  0x39   : > { %1608 = vmatpush3.bf16.msra.mxu0 %v486_v62  ;;  %758 = vmatprep.subr.bf16.mxu1 %v726_v13  ;;  %v718_v39 = vpack.c.bf16 %v662_v32, %v658_v31  ;;  %v661_v41 = vld [vmem:[%s2983_s5 + $0x60] sm:$0xff]  ;;  %v650_v43 = vld [vmem:[%s2983_s5 + $0x8] sm:$0xff]  ;;  %v684_v57 = vld [vmem:[%s2983_s5 + $0x118] sm:$0xff]  ;;  %v735_v61 = vpack.c.bf16 %v695_v54, %v691_v49 }
  0x3a   : > { %1609 = vmatprep.subr.bf16.mxu0 %v493_v3  ;;  %v654_v44 = vld [vmem:[%s2983_s5 + $0x28] sm:$0xff]  ;;  %v717_v47 = vpack.c.bf16 %v661_v41, %v657_v40  ;;  %v649_v51 = vld [vmem:[%s2983_s5] sm:$0xff]  ;;  %v688_v58 = vld [vmem:[%s2983_s5 + $0x138] sm:$0xff] }
  0x3b   : > { %v714_v50 = vpack.c.bf16 %v654_v44, %v650_v43  ;;  %v653_v52 = vld [vmem:[%s2983_s5 + $0x20] sm:$0xff]  ;;  %v610_v55 = vld [vmem:[%s2982_s4 + $0x1c8] sm:$0xff]  ;;  %v683_v62 = vld [vmem:[%s2983_s5 + $0x110] sm:$0xff]  ;;  %v732_v2 = vpack.c.bf16 %v688_v58, %v684_v57 }
  0x3c   : > { %759 = vmatpush1.bf16.msra.mxu1 %v725_v22  ;;  %v614_v56 = vld [vmem:[%s2982_s4 + $0x1e8] sm:$0xff]  ;;  %v713_v59 = vpack.c.bf16 %v653_v52, %v649_v51  ;;  %v746_v60 = vld [vmem:[#allocation2] sm:$0x3]  ;;  %v687_v3 = vld [vmem:[%s2983_s5 + $0x130] sm:$0xff] }
  0x3d   : > { %1610 = vmatpush3.bf16.msra.mxu0 %v485_v11  ;;  %760 = vmatprep.subr.bf16.mxu1 %v722_v25  ;;  %v646_v63 = vpack.c.bf16 %v614_v56, %v610_v55  ;;  %v609_v0 = vld [vmem:[%s2982_s4 + $0x1c0] sm:$0xff]  ;;  %v602_v4 = vld [vmem:[%s2982_s4 + $0x188] sm:$0xff]  ;;  %v676_v6 = vld [vmem:[%s2983_s5 + $0xd8] sm:$0xff]  ;;  %v2163_v9 = vpack.c.bf16 %v746_v60, %v746_v60  ;;  %v731_v11 = vpack.c.bf16 %v687_v3, %v683_v62 }
  0x3e   : > { %1611 = vmatprep.subr.bf16.mxu0 %v492_v16  ;;  %v613_v1 = vld [vmem:[%s2982_s4 + $0x1e0] sm:$0xff]  ;;  %v606_v5 = vld [vmem:[%s2982_s4 + $0x1a8] sm:$0xff]  ;;  %v680_v7 = vld [vmem:[%s2983_s5 + $0xf8] sm:$0xff] }
  0x3f   : > { %v645_v10 = vpack.c.bf16 %v613_v1, %v609_v0  ;;  %v675_v12 = vld [vmem:[%s2983_s5 + $0xd0] sm:$0xff]  ;;  %v642_v13 = vpack.c.bf16 %v606_v5, %v602_v4  ;;  %v601_v14 = vld [vmem:[%s2982_s4 + $0x180] sm:$0xff]  ;;  %v728_v16 = vpack.c.bf16 %v680_v7, %v676_v6  ;;  %v594_v18 = vld [vmem:[%s2982_s4 + $0x148] sm:$0xff] }
  0x40   : > { %761 = vmatpush1.bf16.msra.mxu1 %v721_v36  ;;  %v605_v15 = vld [vmem:[%s2982_s4 + $0x1a0] sm:$0xff]  ;;  %v679_v17 = vld [vmem:[%s2983_s5 + $0xf0] sm:$0xff]  ;;  %v598_v19 = vld [vmem:[%s2982_s4 + $0x168] sm:$0xff] }
  0x41   : > { %1612 = vmatpush3.bf16.msra.mxu0 %v484_v23  ;;  %762 = vmatprep.subr.bf16.mxu1 %v718_v39  ;;  %v668_v20 = vld [vmem:[%s2983_s5 + $0x98] sm:$0xff]  ;;  %v641_v22 = vpack.c.bf16 %v605_v15, %v601_v14  ;;  %v727_v23 = vpack.c.bf16 %v679_v17, %v675_v12  ;;  %v667_v24 = vld [vmem:[%s2983_s5 + $0x90] sm:$0xff]  ;;  %v638_v25 = vpack.c.bf16 %v598_v19, %v594_v18  ;;  %v593_v26 = vld [vmem:[%s2982_s4 + $0x140] sm:$0xff] }
  0x42   : > { %791 = vmatprep.subr.bf16.mxu0 %v744_v29  ;;  %v672_v21 = vld [vmem:[%s2983_s5 + $0xb8] sm:$0xff]  ;;  %v597_v28 = vld [vmem:[%s2982_s4 + $0x160] sm:$0xff]  ;;  %v671_v30 = vld [vmem:[%s2983_s5 + $0xb0] sm:$0xff] }
  0x43   : > { %v724_v29 = vpack.c.bf16 %v672_v21, %v668_v20  ;;  %v586_v31 = vld [vmem:[%s2982_s4 + $0x108] sm:$0xff]  ;;  %v660_v33 = vld [vmem:[%s2983_s5 + $0x58] sm:$0xff]  ;;  %v723_v36 = vpack.c.bf16 %v671_v30, %v667_v24  ;;  %v585_v39 = vld [vmem:[%s2982_s4 + $0x100] sm:$0xff] }
  0x44   : > { %533 = vmatmul.mubr.bf16.vlgmr.msra.gmra.mxu0 %v450_v35  ;;  %763 = vmatpush1.bf16.msra.mxu1 %v717_v47  ;;  %v590_v32 = vld [vmem:[%s2982_s4 + $0x128] sm:$0xff]  ;;  %v664_v34 = vld [vmem:[%s2983_s5 + $0x78] sm:$0xff]  ;;  %v637_v35 = vpack.c.bf16 %v597_v28, %v593_v26  ;;  %v589_v40 = vld [vmem:[%s2982_s4 + $0x120] sm:$0xff] }
  0x45   : > { %792 = vmatpush1.bf16.msra.mxu0 %v743_v37  ;;  %823 = vmatprep.mubr.bf16.mxu0 %v1755_v8  ;;  %v659_v37 = vld [vmem:[%s2983_s5 + $0x50] sm:$0xff]  ;;  %v634_v38 = vpack.c.bf16 %v590_v32, %v586_v31  ;;  %v720_v41 = vpack.c.bf16 %v664_v34, %v660_v33  ;;  %v578_v42 = vld [vmem:[%s2982_s4 + $0xc8] sm:$0xff]  ;;  %v652_v44 = vld [vmem:[%s2983_s5 + $0x18] sm:$0xff]  ;;  %v633_v46 = vpack.c.bf16 %v589_v40, %v585_v39 }
  0x46   : > { %793 = vmatprep.subr.bf16.mxu0 %v740_v27  ;;  %764 = vmatprep.subr.bf16.mxu1 %v714_v50  ;;  %v663_v27 = vld [vmem:[%s2983_s5 + $0x70] sm:$0xff]  ;;  %v582_v43 = vld [vmem:[%s2982_s4 + $0xe8] sm:$0xff]  ;;  %v656_v45 = vld [vmem:[%s2983_s5 + $0x38] sm:$0xff] }
  0x47   : > { %v719_v47 = vpack.c.bf16 %v663_v27, %v659_v37  ;;  %v577_v49 = vld [vmem:[%s2982_s4 + $0xc0] sm:$0xff]  ;;  %v716_v51 = vpack.c.bf16 %v656_v45, %v652_v44  ;;  %v651_v52 = vld [vmem:[%s2983_s5 + $0x10] sm:$0xff]  ;;  %v612_v54 = vld [vmem:[%s2982_s4 + $0x1d8] sm:$0xff] }
  0x48   : > { %765 = vmatpush1.bf16.msra.mxu1 %v713_v59  ;;  %v581_v50 = vld [vmem:[%s2982_s4 + $0xe0] sm:$0xff]  ;;  %v616_v55 = vld [vmem:[%s2982_s4 + $0x1f8] sm:$0xff]  ;;  %v611_v59 = vld [vmem:[%s2982_s4 + $0x1d0] sm:$0xff] }
  0x49   : > { %794 = vmatpush1.bf16.msra.mxu0 %v739_v48  ;;  %832 = vmatprep.subr.bf16.mxu1 %v646_v63  ;;  %v630_v48 = vpack.c.bf16 %v582_v43, %v578_v42  ;;  %v629_v56 = vpack.c.bf16 %v581_v50, %v577_v49  ;;  %v648_v58 = vpack.c.bf16 %v616_v55, %v612_v54  ;;  %v615_v60 = vld [vmem:[%s2982_s4 + $0x1f0] sm:$0xff]  ;;  %v608_v62 = vld [vmem:[%s2982_s4 + $0x1b8] sm:$0xff]  ;;  %v574_v24 = vld [vmem:[%s2982_s4 + $0xa8] sm:$0xff] }
  0x4a   : > { %795 = vmatprep.subr.bf16.mxu0 %v736_v53  ;;  %v655_v53 = vld [vmem:[%s2983_s5 + $0x30] sm:$0xff]  ;;  %v647_v63 = vpack.c.bf16 %v615_v60, %v611_v59  ;;  %v596_v3 = vld [vmem:[%s2982_s4 + $0x158] sm:$0xff]  ;;  %v573_v30 = vld [vmem:[%s2982_s4 + $0xa0] sm:$0xff] }
  0x4b   : > { %783 = vmatmul.mubr.bf16.vlgmr.msra.gmra.mxu1 %v2163_v9  ;;  %v715_v57 = vpack.c.bf16 %v655_v53, %v651_v52  ;;  %v603_v1 = vld [vmem:[%s2982_s4 + $0x190] sm:$0xff]  ;;  %v600_v4 = vld [vmem:[%s2982_s4 + $0x178] sm:$0xff]  ;;  %v566_v37 = vld [vmem:[%s2982_s4 + $0x68] sm:$0xff] }
  0x4c   : > { %833 = vmatpush1.bf16.msra.mxu1 %v645_v10  ;;  %864 = vmatprep.mubr.bf16.mxu1 %v1755_v8  ;;  %v640_v6 = vpack.c.bf16 %v600_v4, %v596_v3  ;;  %v595_v7 = vld [vmem:[%s2982_s4 + $0x150] sm:$0xff]  ;;  %v584_v17 = vld [vmem:[%s2982_s4 + $0xf8] sm:$0xff]  ;;  %v565_v42 = vld [vmem:[%s2982_s4 + $0x60] sm:$0xff] }
  0x4d   : > { %796 = vmatpush1.bf16.msra.mxu0 %v735_v61  ;;  %834 = vmatprep.subr.bf16.mxu1 %v642_v13  ;;  %v604_v61 = vld [vmem:[%s2982_s4 + $0x198] sm:$0xff]  ;;  %v599_v10 = vld [vmem:[%s2982_s4 + $0x170] sm:$0xff]  ;;  %v553_v53 = vld [vmem:[%s2982_s4] sm:$0xff] }
  0x4e   : > { %797 = vmatprep.subr.bf16.mxu0 %v732_v2  ;;  %v644_v0 = vpack.c.bf16 %v608_v62, %v604_v61  ;;  %v607_v2 = vld [vmem:[%s2982_s4 + $0x1b0] sm:$0xff]  ;;  %v639_v12 = vpack.c.bf16 %v599_v10, %v595_v7  ;;  %v576_v28 = vld [vmem:[%s2982_s4 + $0xb8] sm:$0xff]  ;;  %v557_v54 = vld [vmem:[%s2982_s4 + $0x20] sm:$0xff] }
  0x4f   : > { %v643_v5 = vpack.c.bf16 %v607_v2, %v603_v1  ;;  %v587_v14 = vld [vmem:[%s2982_s4 + $0x110] sm:$0xff]  ;;  %v564_v39 = vld [vmem:[%s2982_s4 + $0x58] sm:$0xff]  ;;  %v1118_v59 = vld [vmem:[%s2986_s8 + $0x1c8] sm:$0xff] }
  0x50   : > { %835 = vmatpush1.bf16.msra.mxu1 %v641_v22  ;;  %v591_v15 = vld [vmem:[%s2982_s4 + $0x130] sm:$0xff]  ;;  %v568_v40 = vld [vmem:[%s2982_s4 + $0x78] sm:$0xff]  ;;  %v1122_v60 = vld [vmem:[%s2986_s8 + $0x1e8] sm:$0xff] }
  0x51   : > { %798 = vmatpush1.bf16.msra.mxu0 %v731_v11  ;;  %836 = vmatprep.subr.bf16.mxu1 %v638_v25  ;;  %v588_v11 = vld [vmem:[%s2982_s4 + $0x118] sm:$0xff]  ;;  %v635_v18 = vpack.c.bf16 %v591_v15, %v587_v14  ;;  %v579_v20 = vld [vmem:[%s2982_s4 + $0xd0] sm:$0xff]  ;;  %v624_v27 = vpack.c.bf16 %v568_v40, %v564_v39  ;;  %v1154_v61 = vpack.c.bf16 %v1122_v60, %v1118_v59  ;;  %v540_v2 = vld [vmem:[%s1886_s23] sm:$0x3]  ;;  %s1692_s23 = scalar_lea.vmem %s1509_s2, 64 }
  0x52   : > { %799 = vmatprep.subr.bf16.mxu0 %v728_v16  ;;  %v580_v16 = vld [vmem:[%s2982_s4 + $0xd8] sm:$0xff]  ;;  %v583_v21 = vld [vmem:[%s2982_s4 + $0xf0] sm:$0xff]  ;;  %vm541_vm0 = vcmp.lt.f32.partialorder %v540_v2, 0.5  ;;  %v1117_v15 = vld [vmem:[%s2986_s8 + $0x1c0] sm:$0xff]  ;;  %p1693_p13 = scmp.ne.s32.totalorder %s1509_s2, %s1692_s23  ;;  %p1700_p3 = scmp.lt.s32.totalorder %s1698_s20, %s1692_s23 }
  0x53   : > { %v632_v19 = vpack.c.bf16 %v584_v17, %v580_v16  ;;  %v631_v22 = vpack.c.bf16 %v583_v21, %v579_v20  ;;  %v572_v25 = vld [vmem:[%s2982_s4 + $0x98] sm:$0xff]  ;;  %v571_v33 = vld [vmem:[%s2982_s4 + $0x90] sm:$0xff]  ;;  %v1121_v16 = vld [vmem:[%s2986_s8 + $0x1e0] sm:$0xff] }
  0x54   : > { %837 = vmatpush1.bf16.msra.mxu1 %v637_v35  ;;  %v628_v31 = vpack.c.bf16 %v576_v28, %v572_v25  ;;  %v575_v34 = vld [vmem:[%s2982_s4 + $0xb0] sm:$0xff]  ;;  %v556_v49 = vld [vmem:[%s2982_s4 + $0x18] sm:$0xff]  ;;  %v1110_v17 = vld [vmem:[%s2986_s8 + $0x188] sm:$0xff]  ;;  %v1153_v21 = vpack.c.bf16 %v1121_v16, %v1117_v15  ;;  %p1694_p0 = pnand %p1693_p13, %p1860_p5  ;;  %p1701_p4 = por %p1700_p3, %p1699_p2 }
  0x55   : > { %800 = vmatpush1.bf16.msra.mxu0 %v727_v23  ;;  %838 = vmatprep.subr.bf16.mxu1 %v634_v38  ;;  %v570_v23 = vld [vmem:[%s2982_s4 + $0x88] sm:$0xff]  ;;  %v627_v35 = vpack.c.bf16 %v575_v34, %v571_v33  ;;  %v563_v43 = vld [vmem:[%s2982_s4 + $0x50] sm:$0xff]  ;;  %v560_v50 = vld [vmem:[%s2982_s4 + $0x38] sm:$0xff] }
  0x56   : > { %801 = vmatprep.subr.bf16.mxu0 %v724_v29  ;;  %v626_v26 = vpack.c.bf16 %v574_v24, %v570_v23  ;;  %v569_v29 = vld [vmem:[%s2982_s4 + $0x80] sm:$0xff]  ;;  %v567_v44 = vld [vmem:[%s2982_s4 + $0x70] sm:$0xff]  ;;  %v620_v52 = vpack.c.bf16 %v560_v50, %v556_v49  ;;  %v1120_v62 = vld [vmem:[%s2986_s8 + $0x1d8] sm:$0xff]  ;;  %p1695_p1 = pneg %p1694_p0 }
  0x57   : > { %v625_v32 = vpack.c.bf16 %v573_v30, %v569_v29  ;;  %v555_v55 = vld [vmem:[%s2982_s4 + $0x10] sm:$0xff]  ;;  %v1109_v24 = vld [vmem:[%s2986_s8 + $0x180] sm:$0xff]  ;;  %v1106_v39 = vld [vmem:[%s2986_s8 + $0x168] sm:$0xff] }
  0x58   : > { %839 = vmatpush1.bf16.msra.mxu1 %v633_v46  ;;  %v623_v46 = vpack.c.bf16 %v567_v44, %v563_v43  ;;  %v1113_v25 = vld [vmem:[%s2986_s8 + $0x1a0] sm:$0xff]  ;;  %v1116_v44 = vld [vmem:[%s2986_s8 + $0x1b8] sm:$0xff]  ;;  %v1094_v49 = vld [vmem:[%s2986_s8 + $0x108] sm:$0xff]  ;;  %p1702_p7 = pnand %p1701_p4, %p1695_p1 }
  0x59   : > { %802 = vmatpush1.bf16.msra.mxu0 %v723_v36  ;;  %840 = vmatprep.subr.bf16.mxu1 %v630_v48  ;;  %v562_v36 = vld [vmem:[%s2982_s4 + $0x48] sm:$0xff]  ;;  %v1149_v29 = vpack.c.bf16 %v1113_v25, %v1109_v24  ;;  %v1101_v40 = vld [vmem:[%s2986_s8 + $0x140] sm:$0xff]  ;;  %v1096_v2 = vld [vmem:[%s2986_s8 + $0x118] sm:$0xff] }
  0x5a   : > { %803 = vmatprep.subr.bf16.mxu0 %v720_v41  ;;  %v622_v38 = vpack.c.bf16 %v566_v37, %v562_v36  ;;  %v561_v41 = vld [vmem:[%s2982_s4 + $0x40] sm:$0xff]  ;;  %v558_v48 = vld [vmem:[%s2982_s4 + $0x28] sm:$0xff]  ;;  %v1123_v36 = vld [vmem:[%s2986_s8 + $0x1f0] sm:$0xff] }
  0x5b   : > { %v621_v45 = vpack.c.bf16 %v565_v42, %v561_v41  ;;  %v1105_v41 = vld [vmem:[%s2986_s8 + $0x160] sm:$0xff]  ;;  %v1098_v50 = vld [vmem:[%s2986_s8 + $0x128] sm:$0xff]  ;;  %v1088_v15 = vld [vmem:[%s2986_s8 + $0xd8] sm:$0xff] }
  0x5c   : > { %841 = vmatpush1.bf16.msra.mxu1 %v629_v56  ;;  %v617_v56 = vpack.c.bf16 %v557_v54, %v553_v53  ;;  %v1145_v43 = vpack.c.bf16 %v1105_v41, %v1101_v40  ;;  %v1097_v53 = vld [vmem:[%s2986_s8 + $0x120] sm:$0xff]  ;;  %v1104_v54 = vld [vmem:[%s2986_s8 + $0x158] sm:$0xff]  ;;  %v1074_v24 = vld [vmem:[%s2986_s8 + $0x68] sm:$0xff] }
  0x5d   : > { %804 = vmatpush1.bf16.msra.mxu0 %v719_v47  ;;  %842 = vmatprep.subr.bf16.mxu1 %v626_v26  ;;  %v554_v47 = vld [vmem:[%s2982_s4 + $0x8] sm:$0xff] }
  0x5e   : > { %805 = vmatprep.subr.bf16.mxu0 %v716_v51  ;;  %v618_v51 = vpack.c.bf16 %v558_v48, %v554_v47  ;;  %v1066_v40 = vld [vmem:[%s2986_s8 + $0x28] sm:$0xff] }
  0x60   : > { %843 = vmatpush1.bf16.msra.mxu1 %v625_v32 }
  0x61   : > { %806 = vmatpush1.bf16.msra.mxu0 %v715_v57  ;;  %844 = vmatprep.subr.bf16.mxu1 %v622_v38  ;;  %v559_v57 = vld [vmem:[%s2982_s4 + $0x30] sm:$0xff]  ;;  %v1102_v38 = vld [vmem:[%s2986_s8 + $0x148] sm:$0xff] }
  0x62   : > { %873 = vmatprep.subr.bf16.mxu0 %v648_v58  ;;  %v619_v58 = vpack.c.bf16 %v559_v57, %v555_v55  ;;  %v1146_v42 = vpack.c.bf16 %v1106_v39, %v1102_v38  ;;  %v1103_v57 = vld [vmem:[%s2986_s8 + $0x150] sm:$0xff]  ;;  %v1062_v39 = vld [vmem:[%s2986_s8 + $0x8] sm:$0xff] }
  0x63   : > { %v1126_v41 = vpack.c.bf16 %v1066_v40, %v1062_v39  ;;  %v1004_v40 = vld [vmem:[%s2985_s7 + $0x138] sm:$0xff] }
  0x64   : > { %824 = vmatmul.mubr.bf16.vlgmr.msra.gmra.mxu0 %v2163_v9  ;;  %v592_v9 = vld [vmem:[%s2982_s4 + $0x138] sm:$0xff]  ;;  %845 = vmatpush1.bf16.msra.mxu1 %v621_v45  ;;  %v1111_v45 = vld [vmem:[%s2986_s8 + $0x190] sm:$0xff] }
  0x65   : > { %874 = vmatpush1.bf16.msra.mxu0 %v647_v63  ;;  %905 = vmatprep.mubr.bf16.mxu0 %v1755_v8  ;;  %v636_v13 = vpack.c.bf16 %v592_v9, %v588_v11  ;;  %v1124_v63 = vld [vmem:[%s2986_s8 + $0x1f8] sm:$0xff]  ;;  %v550_v11 = vstv %s549_s26 }
  0x66   : > { %875 = vmatprep.subr.bf16.mxu0 %v644_v0  ;;  %846 = vmatprep.subr.bf16.mxu1 %v618_v51  ;;  %v1156_v0 = vpack.c.bf16 %v1124_v63, %v1120_v62  ;;  %v1142_v51 = vpack.c.bf16 %v1098_v50, %v1094_v49  ;;  %v1090_v62 = vld [vmem:[%s2986_s8 + $0xe8] sm:$0xff]  ;;  %v1159_v50 = vld [vmem:[#allocation2 + $0x2] sm:$0x3] }
  0x68   : > { %847 = vmatpush1.bf16.msra.mxu1 %v617_v56  ;;  %v1108_v56 = vld [vmem:[%s2986_s8 + $0x178] sm:$0xff] }
  0x69   : > { %876 = vmatpush1.bf16.msra.mxu0 %v643_v5  ;;  %1164 = vmatprep.subr.bf16.mxu1 %v1154_v61  ;;  %v546_v5 = vld [vmem:[%s2978_s0] sm:$0x3]  ;;  %v1148_v59 = vpack.c.bf16 %v1108_v56, %v1104_v54  ;;  %v1086_v61 = vld [vmem:[%s2986_s8 + $0xc8] sm:$0xff]  ;;  %v1067_v56 = vld [vmem:[%s2986_s8 + $0x30] sm:$0xff] }
  0x6a   : > { %877 = vmatprep.subr.bf16.mxu0 %v640_v6  ;;  %v547_v6 = vstv %s545_s27  ;;  %v1138_v63 = vpack.c.bf16 %v1090_v62, %v1086_v61  ;;  %v1028_v62 = vld [vmem:[%s2985_s7 + $0x1f8] sm:$0xff] }
  0x6b   : > { %v548_v9 = vmul.f32 %v547_v6, %v546_v5  ;;  %v1095_v5 = vld [vmem:[%s2986_s8 + $0x110] sm:$0xff] }
  0x6c   : > { %v1099_v6 = vld [vmem:[%s2986_s8 + $0x130] sm:$0xff] }
  0x6d   : > { %878 = vmatpush1.bf16.msra.mxu0 %v639_v12 }
  0x6e   : > { %879 = vmatprep.subr.bf16.mxu0 %v636_v13 }
  0x71   : > { %880 = vmatpush1.bf16.msra.mxu0 %v635_v18  ;;  %v1114_v18 = vld [vmem:[%s2986_s8 + $0x1a8] sm:$0xff] }
  0x72   : > { %881 = vmatprep.subr.bf16.mxu0 %v632_v19  ;;  %v1150_v23 = vpack.c.bf16 %v1114_v18, %v1110_v17  ;;  %v1092_v17 = vld [vmem:[%s2986_s8 + $0xf8] sm:$0xff]  ;;  %v1087_v18 = vld [vmem:[%s2986_s8 + $0xd0] sm:$0xff] }
  0x75   : > { %882 = vmatpush1.bf16.msra.mxu0 %v631_v22 }
  0x76   : > { %883 = vmatprep.subr.bf16.mxu0 %v628_v31 }
  0x79   : > { %884 = vmatpush1.bf16.msra.mxu0 %v627_v35  ;;  %v1119_v35 = vld [vmem:[%s2986_s8 + $0x1d0] sm:$0xff] }
  0x7a   : > { %885 = vmatprep.subr.bf16.mxu0 %v624_v27  ;;  %v1155_v37 = vpack.c.bf16 %v1123_v36, %v1119_v35  ;;  %v1112_v27 = vld [vmem:[%s2986_s8 + $0x198] sm:$0xff]  ;;  %v1079_v35 = vld [vmem:[%s2986_s8 + $0x90] sm:$0xff] }
  0x7b   : > { %v1152_v47 = vpack.c.bf16 %v1116_v44, %v1112_v27  ;;  %v1083_v36 = vld [vmem:[%s2986_s8 + $0xb0] sm:$0xff]  ;;  %v1061_v27 = vld [vmem:[%s2986_s8] sm:$0xff] }
  0x7c   : > { %v1135_v38 = vpack.c.bf16 %v1083_v36, %v1079_v35  ;;  %v998_v36 = vld [vmem:[%s2985_s7 + $0x108] sm:$0xff] }
  0x7d   : > { %886 = vmatpush1.bf16.msra.mxu0 %v623_v46  ;;  %v1115_v46 = vld [vmem:[%s2986_s8 + $0x1b0] sm:$0xff] }
  0x7e   : > { %887 = vmatprep.subr.bf16.mxu0 %v620_v52  ;;  %v1151_v48 = vpack.c.bf16 %v1115_v46, %v1111_v45  ;;  %v1093_v52 = vld [vmem:[%s2986_s8 + $0x100] sm:$0xff]  ;;  %v1076_v45 = vld [vmem:[%s2986_s8 + $0x78] sm:$0xff]  ;;  %v1071_v46 = vld [vmem:[%s2986_s8 + $0x50] sm:$0xff] }
  0x7f   : > { %v1141_v55 = vpack.c.bf16 %v1097_v53, %v1093_v52  ;;  %v1064_v52 = vld [vmem:[%s2986_s8 + $0x18] sm:$0xff] }
  0x80   : > { %v1068_v53 = vld [vmem:[%s2986_s8 + $0x38] sm:$0xff] }
  0x81   : > { %888 = vmatpush1.bf16.msra.mxu0 %v619_v58  ;;  %v1107_v58 = vld [vmem:[%s2986_s8 + $0x170] sm:$0xff]  ;;  %v1128_v54 = vpack.c.bf16 %v1068_v53, %v1064_v52  ;;  %v989_v52 = vld [vmem:[%s2985_s7 + $0xc0] sm:$0xff] }
  0x82   : > { %1205 = vmatprep.subr.bf16.mxu0 %v1156_v0  ;;  %v1147_v60 = vpack.c.bf16 %v1107_v58, %v1103_v57  ;;  %v1085_v0 = vld [vmem:[%s2986_s8 + $0xc0] sm:$0xff]  ;;  %v1022_v58 = vld [vmem:[%s2985_s7 + $0x1c8] sm:$0xff] }
  0x83   : > { %v993_v53 = vld [vmem:[%s2985_s7 + $0xe0] sm:$0xff] }
 0x104   : > { %v1613_v1 = vpop.f32.mrf.mxu0 }
 0x106   : > { %v1614_v3 = vpop.f32.mrf.mxu0 }
 0x107   : > { %v1615_v4 = vadd.f32 %v1614_v3, %v1613_v1  ;;  %v1089_v1 = vld [vmem:[%s2986_s8 + $0xe0] sm:$0xff] }
 0x108   : > { %v1616_v7 = vpop.f32.mrf.mxu0  ;;  %v1137_v3 = vpack.c.bf16 %v1089_v1, %v1085_v0  ;;  %v1025_v0 = vld [vmem:[%s2985_s7 + $0x1e0] sm:$0xff] }
 0x109   : > { %v542_v10 = vmul.f32 2.0, %v1615_v4  ;;  %v1100_v4 = vld [vmem:[%s2986_s8 + $0x138] sm:$0xff] }
 0x10a   : > { %v1617_v12 = vpop.f32.mrf.mxu0  ;;  %v1144_v7 = vpack.c.bf16 %v1100_v4, %v1096_v2  ;;  %v1027_v4 = vld [vmem:[%s2985_s7 + $0x1f0] sm:$0xff] }
 0x10b   : > { %v543_v13 = vsel %vm541_vm0, %v542_v10, 0.0  ;;  %v2415_v20 = vpop.f32.mrf.mxu1  ;;  %v1143_v10 = vpack.c.bf16 %v1099_v6, %v1095_v5  ;;  %v1014_v6 = vld [vmem:[%s2985_s7 + $0x188] sm:$0xff] }
 0x10c   : > { %v551_v14 = vmul.f32 %v550_v11, %v543_v13  ;;  %v1078_v11 = vld [vmem:[%s2986_s8 + $0x88] sm:$0xff]  ;;  %v1077_v13 = vld [vmem:[%s2986_s8 + $0x80] sm:$0xff] }
 0x10d   : > { %v2423_v26 = vpop.f32.mrf.mxu1 }
 0x10e   : > { %v552_v19 = vadd.f32 %v551_v14, %v548_v9  ;;  %v1082_v9 = vld [vmem:[%s2986_s8 + $0xa8] sm:$0xff]  ;;  %v1081_v14 = vld [vmem:[%s2986_s8 + $0xa0] sm:$0xff] }
 0x10f   : > { %v788_v28 = vpop.f32.mrf.mxu1  ;;  %v1134_v12 = vpack.c.bf16 %v1082_v9, %v1078_v11  ;;  %v1133_v16 = vpack.c.bf16 %v1081_v14, %v1077_v13  ;;  %v1020_v9 = vld [vmem:[%s2985_s7 + $0x1b8] sm:$0xff]  ;;  %v1017_v13 = vld [vmem:[%s2985_s7 + $0x1a0] sm:$0xff] }
 0x110   : > { %v748_v22 = vpack.c.bf16 %v552_v19, %v552_v19  ;;  %v1091_v19 = vld [vmem:[%s2986_s8 + $0xf0] sm:$0xff]  ;;  %v1069_v28 = vld [vmem:[%s2986_s8 + $0x40] sm:$0xff] }
 0x111   : > { %v789_v30 = vpop.f32.mrf.mxu1 }
 0x112   : > { %865 = vmatmul.mubr.bf16.vlgmr.msra.gmra.mxu1 %v748_v22  ;;  %906 = vmatmul.mubr.bf16.vlgmr.msra.gmra.mxu0 %v748_v22  ;;  %v1139_v22 = vpack.c.bf16 %v1091_v19, %v1087_v18  ;;  %v1080_v30 = vld [vmem:[%s2986_s8 + $0x98] sm:$0xff]  ;;  %v1006_v19 = vld [vmem:[%s2985_s7 + $0x148] sm:$0xff] }
 0x113   : > { %1165 = vmatpush1.bf16.msra.mxu1 %v1153_v21  ;;  %1196 = vmatprep.mubr.bf16.mxu1 %v1755_v8  ;;  %v1140_v21 = vpack.c.bf16 %v1092_v17, %v1088_v15  ;;  %v1019_v17 = vld [vmem:[%s2985_s7 + $0x1b0] sm:$0xff] }
 0x114   : > { %1166 = vmatprep.subr.bf16.mxu1 %v1150_v23  ;;  %1237 = vmatprep.mubr.bf16.mxu0 %v1755_v8  ;;  %v1070_v23 = vld [vmem:[%s2986_s8 + $0x48] sm:$0xff] }
 0x115   : > { %1206 = vmatpush1.bf16.msra.mxu0 %v1155_v37  ;;  %v1130_v25 = vpack.c.bf16 %v1074_v24, %v1070_v23  ;;  %v1012_v24 = vld [vmem:[%s2985_s7 + $0x178] sm:$0xff] }
 0x116   : > { %1207 = vmatprep.subr.bf16.mxu0 %v1152_v47  ;;  %v1075_v47 = vld [vmem:[%s2986_s8 + $0x70] sm:$0xff] }
 0x117   : > { %1167 = vmatpush1.bf16.msra.mxu1 %v1149_v29  ;;  %v1073_v29 = vld [vmem:[%s2986_s8 + $0x60] sm:$0xff]  ;;  %v1131_v49 = vpack.c.bf16 %v1075_v47, %v1071_v46  ;;  %v990_v47 = vld [vmem:[%s2985_s7 + $0xc8] sm:$0xff] }
 0x118   : > { %1168 = vmatprep.subr.bf16.mxu1 %v1146_v42  ;;  %v1065_v42 = vld [vmem:[%s2986_s8 + $0x20] sm:$0xff] }
 0x119   : > { %1208 = vmatpush1.bf16.msra.mxu0 %v1151_v48  ;;  %v1125_v44 = vpack.c.bf16 %v1065_v42, %v1061_v27  ;;  %v1001_v27 = vld [vmem:[%s2985_s7 + $0x120] sm:$0xff] }
 0x11a   : > { %1209 = vmatprep.subr.bf16.mxu0 %v1148_v59  ;;  %v1026_v59 = vld [vmem:[%s2985_s7 + $0x1e8] sm:$0xff] }
 0x11b   : > { %1169 = vmatpush1.bf16.msra.mxu1 %v1145_v43  ;;  %v1072_v43 = vld [vmem:[%s2986_s8 + $0x58] sm:$0xff]  ;;  %v1058_v61 = vpack.c.bf16 %v1026_v59, %v1022_v58  ;;  %v982_v58 = vld [vmem:[%s2985_s7 + $0x88] sm:$0xff] }
 0x11c   : > { %1170 = vmatprep.subr.bf16.mxu1 %v1142_v51  ;;  %v1132_v48 = vpack.c.bf16 %v1076_v45, %v1072_v43  ;;  %v1163_v51 = vpack.c.bf16 %v1159_v50, %v1159_v50  ;;  %v1003_v45 = vld [vmem:[%s2985_s7 + $0x130] sm:$0xff] }
 0x11d   : > { %1210 = vmatpush1.bf16.msra.mxu0 %v1147_v60  ;;  %v1024_v60 = vld [vmem:[%s2985_s7 + $0x1d8] sm:$0xff] }
 0x11e   : > { %1211 = vmatprep.subr.bf16.mxu0 %v1144_v7  ;;  %v1060_v1 = vpack.c.bf16 %v1028_v62, %v1024_v60  ;;  %v1018_v7 = vld [vmem:[%s2985_s7 + $0x1a8] sm:$0xff]  ;;  %v988_v62 = vld [vmem:[%s2985_s7 + $0xb8] sm:$0xff] }
 0x11f   : > { %1171 = vmatpush1.bf16.msra.mxu1 %v1141_v55  ;;  %v1063_v55 = vld [vmem:[%s2986_s8 + $0x10] sm:$0xff]  ;;  %v1054_v11 = vpack.c.bf16 %v1018_v7, %v1014_v6  ;;  %v986_v60 = vld [vmem:[%s2985_s7 + $0xa8] sm:$0xff] }
 0x120   : > { %1172 = vmatprep.subr.bf16.mxu1 %v1138_v63  ;;  %v1127_v57 = vpack.c.bf16 %v1067_v56, %v1063_v55  ;;  %v1021_v63 = vld [vmem:[%s2985_s7 + $0x1c0] sm:$0xff]  ;;  %v1041_v55 = vpack.c.bf16 %v993_v53, %v989_v52  ;;  %v991_v56 = vld [vmem:[%s2985_s7 + $0xd0] sm:$0xff]  ;;  %v974_v6 = vld [vmem:[%s2985_s7 + $0x48] sm:$0xff] }
 0x121   : > { %1212 = vmatpush1.bf16.msra.mxu0 %v1143_v10  ;;  %v1057_v2 = vpack.c.bf16 %v1025_v0, %v1021_v63  ;;  %v1016_v10 = vld [vmem:[%s2985_s7 + $0x198] sm:$0xff]  ;;  %v1038_v63 = vpack.c.bf16 %v986_v60, %v982_v58  ;;  %v978_v7 = vld [vmem:[%s2985_s7 + $0x68] sm:$0xff] }
 0x122   : > { %1213 = vmatprep.subr.bf16.mxu0 %v1140_v21  ;;  %v1056_v14 = vpack.c.bf16 %v1020_v9, %v1016_v10  ;;  %v1010_v21 = vld [vmem:[%s2985_s7 + $0x168] sm:$0xff]  ;;  %v976_v9 = vld [vmem:[%s2985_s7 + $0x58] sm:$0xff] }
 0x123   : > { %1173 = vmatpush1.bf16.msra.mxu1 %v1137_v3  ;;  %v1023_v3 = vld [vmem:[%s2985_s7 + $0x1d0] sm:$0xff]  ;;  %v1050_v23 = vpack.c.bf16 %v1010_v21, %v1006_v19  ;;  %v970_v19 = vld [vmem:[%s2985_s7 + $0x28] sm:$0xff]  ;;  %v968_v21 = vld [vmem:[%s2985_s7 + $0x18] sm:$0xff] }
 0x124   : > { %v2427_v31 = vpop.f32.mrf.mxu0  ;;  %1174 = vmatprep.subr.bf16.mxu1 %v1134_v12  ;;  %v1059_v5 = vpack.c.bf16 %v1027_v4, %v1023_v3  ;;  %v1013_v12 = vld [vmem:[%s2985_s7 + $0x180] sm:$0xff]  ;;  %v983_v3 = vld [vmem:[%s2985_s7 + $0x90] sm:$0xff] }
 0x125   : > { %1214 = vmatpush1.bf16.msra.mxu0 %v1139_v22  ;;  %v1053_v15 = vpack.c.bf16 %v1017_v13, %v1013_v12  ;;  %v1008_v22 = vld [vmem:[%s2985_s7 + $0x158] sm:$0xff]  ;;  %v973_v13 = vld [vmem:[%s2985_s7 + $0x40] sm:$0xff] }
 0x126   : > { %v2429_v32 = vpop.f32.mrf.mxu0  ;;  %v980_v12 = vld [vmem:[%s2985_s7 + $0x78] sm:$0xff] }
 0x127   : > { %1175 = vmatpush1.bf16.msra.mxu1 %v1133_v16  ;;  %v1015_v16 = vld [vmem:[%s2985_s7 + $0x190] sm:$0xff] }
 0x128   : > { %v829_v33 = vpop.f32.mrf.mxu0  ;;  %1176 = vmatprep.subr.bf16.mxu1 %v1130_v25  ;;  %v1055_v18 = vpack.c.bf16 %v1019_v17, %v1015_v16  ;;  %v1005_v25 = vld [vmem:[%s2985_s7 + $0x140] sm:$0xff]  ;;  %v975_v16 = vld [vmem:[%s2985_s7 + $0x50] sm:$0xff] }
 0x129   : > { %v1129_v33 = vpack.c.bf16 %v1073_v29, %v1069_v28  ;;  %v1009_v28 = vld [vmem:[%s2985_s7 + $0x160] sm:$0xff]  ;;  %v1052_v29 = vpack.c.bf16 %v1012_v24, %v1008_v22  ;;  %v979_v17 = vld [vmem:[%s2985_s7 + $0x70] sm:$0xff]  ;;  %v972_v24 = vld [vmem:[%s2985_s7 + $0x38] sm:$0xff] }
 0x12a   : > { %v830_v34 = vpop.f32.mrf.mxu0 }
 0x12b   : > { %v1084_v34 = vld [vmem:[%s2986_s8 + $0xb8] sm:$0xff]  ;;  %1177 = vmatpush1.bf16.msra.mxu1 %v1129_v33  ;;  %v1007_v33 = vld [vmem:[%s2985_s7 + $0x150] sm:$0xff] }
 0x12c   : > { %v1136_v37 = vpack.c.bf16 %v1084_v34, %v1080_v30  ;;  %1178 = vmatprep.subr.bf16.mxu1 %v1126_v41  ;;  %v1049_v30 = vpack.c.bf16 %v1009_v28, %v1005_v25  ;;  %v1011_v34 = vld [vmem:[%s2985_s7 + $0x170] sm:$0xff]  ;;  %v997_v41 = vld [vmem:[%s2985_s7 + $0x100] sm:$0xff] }
 0x12d   : > { %v1051_v35 = vpack.c.bf16 %v1011_v34, %v1007_v33  ;;  %v1045_v43 = vpack.c.bf16 %v1001_v27, %v997_v41  ;;  %v965_v25 = vld [vmem:[%s2985_s7] sm:$0xff]  ;;  %v967_v33 = vld [vmem:[%s2985_s7 + $0x10] sm:$0xff] }
 0x12e   : > { %1215 = vmatprep.subr.bf16.mxu0 %v1136_v37  ;;  %v1002_v37 = vld [vmem:[%s2985_s7 + $0x128] sm:$0xff]  ;;  %v971_v34 = vld [vmem:[%s2985_s7 + $0x30] sm:$0xff] }
 0x12f   : > { %1216 = vmatpush1.bf16.msra.mxu0 %v1135_v38  ;;  %1179 = vmatpush1.bf16.msra.mxu1 %v1125_v44  ;;  %v1000_v38 = vld [vmem:[%s2985_s7 + $0x118] sm:$0xff]  ;;  %v1046_v39 = vpack.c.bf16 %v1002_v37, %v998_v36  ;;  %v999_v44 = vld [vmem:[%s2985_s7 + $0x110] sm:$0xff]  ;;  %v1031_v36 = vpack.c.bf16 %v971_v34, %v967_v33  ;;  %v915_v37 = vlaneseq  ;;  %v1408_v34 = vld [vmem:[%s2988_s10 + $0xe0] sm:$0xff] }
 0x130   : > { %1217 = vmatprep.subr.bf16.mxu0 %v1132_v48  ;;  %1246 = vmatprep.subr.bf16.mxu1 %v1058_v61  ;;  %v1048_v42 = vpack.c.bf16 %v1004_v40, %v1000_v38  ;;  %v1047_v46 = vpack.c.bf16 %v1003_v45, %v999_v44  ;;  %v994_v48 = vld [vmem:[%s2985_s7 + $0xe8] sm:$0xff]  ;;  %v984_v61 = vld [vmem:[%s2985_s7 + $0x98] sm:$0xff]  ;;  %v745_v40 = vld [vmem:[%s2984_s6] sm:$0xf] }
 0x131   : > { %v1042_v50 = vpack.c.bf16 %v994_v48, %v990_v47  ;;  %v1040_v0 = vpack.c.bf16 %v988_v62, %v984_v61  ;;  %v2787_v38 = vshrl.u32 %v915_v37, 7  ;;  %v1405_v37 = vld [vmem:[%s2988_s10 + $0xc8] sm:$0xff] }
 0x132   : > { %1197 = vmatmul.mubr.bf16.vlgmr.msra.gmra.mxu1 %v1163_v51 }
 0x133   : > { %1218 = vmatpush1.bf16.msra.mxu0 %v1131_v49  ;;  %1278 = vmatprep.mubr.bf16.mxu1 %v1755_v8  ;;  %v992_v49 = vld [vmem:[%s2985_s7 + $0xd8] sm:$0xff]  ;;  %v2796_v41 = vsub.s32 1, %v2787_v38 }
 0x134   : > { %1219 = vmatprep.subr.bf16.mxu0 %v1128_v54  ;;  %1247 = vmatpush1.bf16.msra.mxu1 %v1057_v2  ;;  %v985_v2 = vld [vmem:[%s2985_s7 + $0xa0] sm:$0xff] }
 0x135   : > { %1248 = vmatprep.subr.bf16.mxu1 %v1054_v11  ;;  %v1034_v11 = vpack.c.bf16 %v978_v7, %v974_v6  ;;  %v922_v45 = vrot.slane %v745_v40, %v2796_v41 }
 0x137   : > { %1220 = vmatpush1.bf16.msra.mxu0 %v1127_v57  ;;  %v995_v57 = vld [vmem:[%s2985_s7 + $0xf0] sm:$0xff] }
 0x138   : > { %1287 = vmatprep.subr.bf16.mxu0 %v1060_v1  ;;  %1249 = vmatpush1.bf16.msra.mxu1 %v1053_v15  ;;  %v1043_v59 = vpack.c.bf16 %v995_v57, %v991_v56  ;;  %v981_v1 = vld [vmem:[%s2985_s7 + $0x80] sm:$0xff] }
 0x139   : > { %1250 = vmatprep.subr.bf16.mxu1 %v1050_v23  ;;  %v1037_v4 = vpack.c.bf16 %v985_v2, %v981_v1  ;;  %v977_v15 = vld [vmem:[%s2985_s7 + $0x60] sm:$0xff]  ;;  %v1035_v23 = vpack.c.bf16 %v979_v17, %v975_v16 }
 0x13a   : > { %1238 = vmatmul.mubr.bf16.vlgmr.msra.gmra.mxu0 %v1163_v51  ;;  %v996_v51 = vld [vmem:[%s2985_s7 + $0xf8] sm:$0xff]  ;;  %v1033_v22 = vpack.c.bf16 %v977_v15, %v973_v13 }
 0x13b   : > { %1288 = vmatpush1.bf16.msra.mxu0 %v1059_v5  ;;  %1319 = vmatprep.mubr.bf16.mxu0 %v1755_v8  ;;  %v1044_v54 = vpack.c.bf16 %v996_v51, %v992_v49  ;;  %v987_v5 = vld [vmem:[%s2985_s7 + $0xb0] sm:$0xff] }
 0x13c   : > { %1289 = vmatprep.subr.bf16.mxu0 %v1056_v14  ;;  %1251 = vmatpush1.bf16.msra.mxu1 %v1049_v30  ;;  %v1039_v10 = vpack.c.bf16 %v987_v5, %v983_v3  ;;  %v1036_v14 = vpack.c.bf16 %v980_v12, %v976_v9  ;;  %v969_v30 = vld [vmem:[%s2985_s7 + $0x20] sm:$0xff] }
 0x13d   : > { %1252 = vmatprep.subr.bf16.mxu1 %v1046_v39  ;;  %v2790_v39 = vsub.s32 0, %v2787_v38 }
 0x13f   : > { %1290 = vmatpush1.bf16.msra.mxu0 %v1055_v18  ;;  %v966_v18 = vld [vmem:[%s2985_s7 + $0x8] sm:$0xff]  ;;  %v918_v27 = vrot.slane %v745_v40, %v2790_v39 }
 0x140   : > { %1291 = vmatprep.subr.bf16.mxu0 %v1052_v29  ;;  %1253 = vmatpush1.bf16.msra.mxu1 %v1045_v43  ;;  %v1030_v28 = vpack.c.bf16 %v970_v19, %v966_v18  ;;  %v1032_v29 = vpack.c.bf16 %v972_v24, %v968_v21 }
 0x141   : > { %1254 = vmatprep.subr.bf16.mxu1 %v1042_v50  ;;  %v929_v50 = vsub.s32 3, %v2787_v38 }
 0x143   : > { %1292 = vmatpush1.bf16.msra.mxu0 %v1051_v35  ;;  %v1029_v35 = vpack.c.bf16 %v969_v30, %v965_v25  ;;  %v1409_v30 = vld [vmem:[%s2988_s10 + $0xe8] sm:$0xff] }
 0x144   : > { %1293 = vmatprep.subr.bf16.mxu0 %v1048_v42  ;;  %1255 = vmatpush1.bf16.msra.mxu1 %v1041_v55 }
 0x145   : > { %1256 = vmatprep.subr.bf16.mxu1 %v1038_v63 }
 0x147   : > { %1294 = vmatpush1.bf16.msra.mxu0 %v1047_v46 }
 0x148   : > { %1295 = vmatprep.subr.bf16.mxu0 %v1044_v54  ;;  %1257 = vmatpush1.bf16.msra.mxu1 %v1037_v4 }
 0x149   : > { %1258 = vmatprep.subr.bf16.mxu1 %v1034_v11 }
 0x14b   : > { %1296 = vmatpush1.bf16.msra.mxu0 %v1043_v59 }
 0x14c   : > { %1297 = vmatprep.subr.bf16.mxu0 %v1040_v0  ;;  %1259 = vmatpush1.bf16.msra.mxu1 %v1033_v22 }
 0x14d   : > { %1260 = vmatprep.subr.bf16.mxu1 %v1030_v28 }
 0x14f   : > { %1298 = vmatpush1.bf16.msra.mxu0 %v1039_v10  ;;  %v747_v10 = vld [vmem:[#allocation3] sm:$0x3] }
 0x150   : > { %1299 = vmatprep.subr.bf16.mxu0 %v1036_v14  ;;  %1261 = vmatpush1.bf16.msra.mxu1 %v1029_v35  ;;  %v1410_v35 = vld [vmem:[%s2988_s10 + $0xf0] sm:$0xff] }
 0x153   : > { %1300 = vmatpush1.bf16.msra.mxu0 %v1035_v23 }
 0x154   : > { %1301 = vmatprep.subr.bf16.mxu0 %v1032_v29 }
 0x157   : > { %1302 = vmatpush1.bf16.msra.mxu0 %v1031_v36  ;;  %v1426_v36 = vpack.c.bf16 %v1410_v35, %v1408_v34 }
 0x1d2   : > { %v866_v42 = vpop.f32.mrf.mxu1  ;;  %v907_v43 = vpop.f32.mrf.mxu0 }
 0x1d3   : > { %v867_v44 = vadd.f32 %v866_v42, %v2415_v20  ;;  %v930_v20 = vrot.slane %v745_v40, %v929_v50  ;;  %v908_v63 = vadd.f32 %v907_v43, %v2427_v31  ;;  %v1404_v42 = vld [vmem:[%s2988_s10 + $0xc0] sm:$0xff]  ;;  %v1406_v43 = vld [vmem:[%s2988_s10 + $0xd0] sm:$0xff] }
 0x1d4   : > { %v868_v46 = vpop.f32.mrf.mxu1  ;;  %v909_v47 = vpop.f32.mrf.mxu0 }
 0x1d5   : > { %v935_v48 = vadd.f32 %v918_v27, %v867_v44  ;;  %v869_v49 = vadd.f32 %v868_v46, %v2423_v26  ;;  %v910_v59 = vadd.f32 %v909_v47, %v2429_v32  ;;  %v925_v26 = vsub.s32 2, %v2787_v38  ;;  %v1403_v46 = vld [vmem:[%s2988_s10 + $0xb8] sm:$0xff] }
 0x1d6   : > { %v870_v51 = vpop.f32.mrf.mxu1  ;;  %v911_v52 = vpop.f32.mrf.mxu0  ;;  %v1424_v44 = vpack.c.bf16 %v1406_v43, %v1404_v42 }
 0x1d7   : > { %v939_v53 = vsub.f32 0.0, %v935_v48  ;;  %v936_v54 = vadd.f32 %v922_v45, %v869_v49  ;;  %v938_v61 = vadd.f32 %v930_v20, %v910_v59  ;;  %v926_v0 = vrot.slane %v745_v40, %v925_v26  ;;  %v1407_v40 = vld [vmem:[%s2988_s10 + $0xd8] sm:$0xff]  ;;  %v1401_v45 = vld [vmem:[%s2988_s10 + $0xa8] sm:$0xff]  ;;  %v1400_v48 = vld [vmem:[%s2988_s10 + $0xa0] sm:$0xff] }
 0x1d8   : > { %v871_v55 = vpop.f32.mrf.mxu1  ;;  %v912_v56 = vpop.f32.mrf.mxu0  ;;  %v1425_v27 = vpack.c.bf16 %v1407_v40, %v1405_v37  ;;  %v1423_v47 = vpack.c.bf16 %v1403_v46, %v1401_v45  ;;  %v1402_v49 = vld [vmem:[%s2988_s10 + $0xb0] sm:$0xff]  ;;  %v1397_v52 = vld [vmem:[%s2988_s10 + $0x88] sm:$0xff]  ;;  %v1395_v59 = vld [vmem:[%s2988_s10 + $0x78] sm:$0xff] }
 0x1d9   : > { %v940_v57 = vmul.f32 1.442695, %v939_v53  ;;  %v945_v58 = vsub.f32 0.0, %v936_v54  ;;  %v952_v62 = vsub.f32 0.0, %v938_v61  ;;  %v937_v3 = vadd.f32 %v926_v0, %v908_v63  ;;  %v1399_v53 = vld [vmem:[%s2988_s10 + $0x98] sm:$0xff]  ;;  %v1396_v55 = vld [vmem:[%s2988_s10 + $0x80] sm:$0xff] }
 0x1da   : > { %v1422_v51 = vpack.c.bf16 %v1402_v49, %v1400_v48  ;;  %v1421_v54 = vpack.c.bf16 %v1399_v53, %v1397_v52  ;;  %v1398_v56 = vld [vmem:[%s2988_s10 + $0x90] sm:$0xff]  ;;  %v1392_v20 = vld [vmem:[%s2988_s10 + $0x60] sm:$0xff]  ;;  %v1391_v63 = vld [vmem:[%s2988_s10 + $0x58] sm:$0xff] }
 0x1db   : > { %1660 = vpow2.f32 %v940_v57  ;;  %v946_v60 = vmul.f32 1.442695, %v945_v58  ;;  %v953_v1 = vmul.f32 1.442695, %v952_v62  ;;  %v1420_v57 = vpack.c.bf16 %v1398_v56, %v1396_v55  ;;  %v1393_v58 = vld [vmem:[%s2988_s10 + $0x68] sm:$0xff]  ;;  %v1394_v61 = vld [vmem:[%s2988_s10 + $0x70] sm:$0xff] }
 0x1dc   : > { %v1389_v62 = vld [vmem:[%s2988_s10 + $0x48] sm:$0xff]  ;;  %v1418_v0 = vpack.c.bf16 %v1394_v61, %v1392_v20  ;;  %v1161_v56 = vld [vmem:[#allocation3 + $0x2] sm:$0x3] }
 0x1dd   : > { %1662 = vpow2.f32 %v946_v60  ;;  %v1419_v60 = vpack.c.bf16 %v1395_v59, %v1393_v58 }
 0x1de   : > { %1664 = vpow2.f32 %v953_v1  ;;  %v1417_v1 = vpack.c.bf16 %v1391_v63, %v1389_v62  ;;  %v1428_v63 = vld [vmem:[%s2989_s11] sm:$0x3] }
 0x1e8   : > { %v1661_v2 = vpop.eup %1660 }
 0x1e9   : > { %v942_v4 = vadd.f32 1.0, %v1661_v2  ;;  %v1388_v2 = vld [vmem:[%s2988_s10 + $0x40] sm:$0xff] }
 0x1ea   : > { %v1663_v32 = vpop.eup %1662 }
 0x1eb   : > { %1666 = vrcp.f32 %v942_v4  ;;  %v948_v5 = vadd.f32 1.0, %v1663_v32  ;;  %v1665_v6 = vpop.eup %1664  ;;  %v1385_v4 = vld [vmem:[%s2988_s10 + $0x28] sm:$0xff]  ;;  %v1387_v32 = vld [vmem:[%s2988_s10 + $0x38] sm:$0xff] }
 0x1ec   : > { %1668 = vtanh.f32 %v937_v3  ;;  %v955_v12 = vadd.f32 1.0, %v1665_v6  ;;  %v1390_v3 = vld [vmem:[%s2988_s10 + $0x50] sm:$0xff]  ;;  %v1415_v6 = vpack.c.bf16 %v1387_v32, %v1385_v4 }
 0x1ed   : > { %1670 = vrcp.f32 %v948_v5  ;;  %v1416_v5 = vpack.c.bf16 %v1390_v3, %v1388_v2 }
 0x1ee   : > { %1672 = vrcp.f32 %v955_v12 }
 0x1f2   : > { %v2811_v19 = vpop.f32.mrf.mxu1 }
 0x1f4   : > { %v2813_v21 = vpop.f32.mrf.mxu1 }
 0x1f6   : > { %v1202_v22 = vpop.f32.mrf.mxu1 }
 0x1f8   : > { %v1667_v7 = vpop.eup %1666  ;;  %v1203_v24 = vpop.f32.mrf.mxu1 }
 0x1f9   : > { %v1669_v11 = vpop.eup %1668 }
 0x1fa   : > { %v1671_v9 = vpop.eup %1670  ;;  %v959_v31 = vmul.f32 %v1669_v11, %v1667_v7  ;;  %v2815_v23 = vpop.f32.mrf.mxu0  ;;  %v1384_v7 = vld [vmem:[%s2988_s10 + $0x20] sm:$0xff]  ;;  %v1381_v11 = vld [vmem:[%s2988_s10 + $0x8] sm:$0xff] }
 0x1fb   : > { %v958_v13 = vmul.f32 %v1671_v9, %v747_v10  ;;  %v1673_v15 = vpop.eup %1672  ;;  %v1386_v10 = vld [vmem:[%s2988_s10 + $0x30] sm:$0xff]  ;;  %v1383_v9 = vld [vmem:[%s2988_s10 + $0x18] sm:$0xff] }
 0x1fc   : > { %v2817_v25 = vpop.f32.mrf.mxu0  ;;  %v1414_v12 = vpack.c.bf16 %v1386_v10, %v1384_v7 }
 0x1fd   : > { %v960_v14 = vadd.f32 %v959_v31, %v958_v13  ;;  %v1413_v31 = vpack.c.bf16 %v1383_v9, %v1381_v11  ;;  %v1380_v13 = vld [vmem:[%s2988_s10] sm:$0xff] }
 0x1fe   : > { %v1243_v28 = vpop.f32.mrf.mxu0 }
 0x1ff   : > { %963 = vst [vmem:[#allocation3] sm:$0x3] %v960_v14  ;;  %1674 = vtanh.f32 %v960_v14  ;;  %v1382_v14 = vld [vmem:[%s2988_s10 + $0x10] sm:$0xff] }
 0x200   : > { %v1244_v29 = vpop.f32.mrf.mxu0 }
 0x20c   : > { %v1675_v16 = vpop.eup %1674 }
 0x20d   : > { %v962_v17 = vmul.f32 %v1675_v16, %v1673_v15  ;;  %v1412_v15 = vpack.c.bf16 %v1382_v14, %v1380_v13  ;;  %v1157_v16 = vld [vmem:[%s2987_s9] sm:$0xf] }
 0x20e   : > { %v1336_v28 = vrot.slane %v1157_v16, %v2796_v41  ;;  %v1340_v48 = vrot.slane %v1157_v16, %v925_v26 }
 0x20f   : > { %964 = vst [vmem:[#allocation2] sm:$0x3] %v962_v17  ;;  %v1162_v18 = vpack.c.bf16 %v962_v17, %v962_v17  ;;  %v1332_v17 = vrot.slane %v1157_v16, %v2790_v39 }
 0x211   : > { %1279 = vmatmul.mubr.bf16.vlgmr.msra.gmra.mxu1 %v1162_v18  ;;  %1320 = vmatmul.mubr.bf16.vlgmr.msra.gmra.mxu0 %v1162_v18 }
 0x212   : > { %1472 = vmatprep.mubr.bf16.mxu1 %v1755_v8  ;;  %v1411_v8 = vld [vmem:[%s2988_s10 + $0xf8] sm:$0xff] }
 0x213   : > { %v1427_v33 = vpack.c.bf16 %v1411_v8, %v1409_v30 }
 0x215   : > { %1440 = vmatprep.subr.bf16.mxu1 %v1427_v33 }
 0x216   : > { %1441 = vmatpush1.bf16.msra.mxu1 %v1426_v36 }
 0x217   : > { %1442 = vmatprep.subr.bf16.mxu1 %v1425_v27 }
 0x21a   : > { %1443 = vmatpush1.bf16.msra.mxu1 %v1424_v44 }
 0x21b   : > { %1444 = vmatprep.subr.bf16.mxu1 %v1423_v47 }
 0x21e   : > { %1445 = vmatpush1.bf16.msra.mxu1 %v1422_v51 }
 0x21f   : > { %1446 = vmatprep.subr.bf16.mxu1 %v1421_v54 }
 0x222   : > { %1447 = vmatpush1.bf16.msra.mxu1 %v1420_v57 }
 0x223   : > { %1448 = vmatprep.subr.bf16.mxu1 %v1419_v60 }
 0x226   : > { %1449 = vmatpush1.bf16.msra.mxu1 %v1418_v0  ;;  %v1433_v0 = vrot.slane %v1428_v63, %v2790_v39 }
 0x227   : > { %1450 = vmatprep.subr.bf16.mxu1 %v1417_v1  ;;  %v1437_v1 = vrot.slane %v1428_v63, %v2796_v41 }
 0x22a   : > { %1451 = vmatpush1.bf16.msra.mxu1 %v1416_v5 }
 0x22b   : > { %1452 = vmatprep.subr.bf16.mxu1 %v1415_v6 }
 0x22e   : > { %1453 = vmatpush1.bf16.msra.mxu1 %v1414_v12 }
 0x22f   : > { %1454 = vmatprep.subr.bf16.mxu1 %v1413_v31 }
 0x232   : > { %1455 = vmatpush1.bf16.msra.mxu1 %v1412_v15 }
 0x2d1   : > { %v1280_v18 = vpop.f32.mrf.mxu1  ;;  %v1321_v22 = vpop.f32.mrf.mxu0 }
 0x2d2   : > { %v1281_v24 = vadd.f32 %v1280_v18, %v2811_v19  ;;  %v1344_v19 = vrot.slane %v1157_v16, %v929_v50 }
 0x2d3   : > { %v1282_v29 = vpop.f32.mrf.mxu1  ;;  %v1323_v30 = vpop.f32.mrf.mxu0 }
 0x2d4   : > { %v1349_v8 = vadd.f32 %v1332_v17, %v1281_v24  ;;  %v1283_v33 = vadd.f32 %v1282_v29, %v2813_v21  ;;  %v1324_v44 = vadd.f32 %v1323_v30, %v2817_v25  ;;  %v1322_v21 = vadd.f32 %v1321_v22, %v2815_v23 }
 0x2d5   : > { %v1284_v34 = vpop.f32.mrf.mxu1  ;;  %v1325_v35 = vpop.f32.mrf.mxu0 }
 0x2d6   : > { %v1353_v36 = vsub.f32 0.0, %v1349_v8  ;;  %v1350_v37 = vadd.f32 %v1336_v28, %v1283_v33  ;;  %v1352_v46 = vadd.f32 %v1344_v19, %v1324_v44  ;;  %v1351_v52 = vadd.f32 %v1340_v48, %v1322_v21 }
 0x2d7   : > { %v1285_v40 = vpop.f32.mrf.mxu1  ;;  %v1326_v27 = vpop.f32.mrf.mxu0 }
 0x2d8   : > { %v1354_v42 = vmul.f32 1.442695, %v1353_v36  ;;  %v1359_v43 = vsub.f32 0.0, %v1350_v37  ;;  %v1366_v47 = vsub.f32 0.0, %v1352_v46 }
 0x2da   : > { %1676 = vpow2.f32 %v1354_v42  ;;  %v1360_v45 = vmul.f32 1.442695, %v1359_v43  ;;  %v1367_v49 = vmul.f32 1.442695, %v1366_v47 }
 0x2dc   : > { %1678 = vpow2.f32 %v1360_v45 }
 0x2dd   : > { %1680 = vpow2.f32 %v1367_v49 }
 0x2e7   : > { %v1677_v51 = vpop.eup %1676 }
 0x2e8   : > { %v1356_v53 = vadd.f32 1.0, %v1677_v51 }
 0x2e9   : > { %v1679_v54 = vpop.eup %1678 }
 0x2ea   : > { %1682 = vrcp.f32 %v1356_v53  ;;  %v1362_v25 = vadd.f32 1.0, %v1679_v54  ;;  %v1681_v50 = vpop.eup %1680 }
 0x2eb   : > { %1684 = vtanh.f32 %v1351_v52  ;;  %v1369_v59 = vadd.f32 1.0, %v1681_v50 }
 0x2ec   : > { %1686 = vrcp.f32 %v1362_v25 }
 0x2ed   : > { %1688 = vrcp.f32 %v1369_v59 }
 0x2f7   : > { %v1683_v55 = vpop.eup %1682 }
 0x2f8   : > { %v1685_v57 = vpop.eup %1684 }
 0x2f9   : > { %v1687_v58 = vpop.eup %1686  ;;  %v1373_v23 = vmul.f32 %v1685_v57, %v1683_v55 }
 0x2fa   : > { %v1372_v20 = vmul.f32 %v1687_v58, %v1161_v56  ;;  %v1689_v26 = vpop.eup %1688 }
 0x2fc   : > { %v1374_v38 = vadd.f32 %v1373_v23, %v1372_v20 }
 0x2fe   : > { %1377 = vst [vmem:[#allocation3 + $0x2] sm:$0x3] %v1374_v38  ;;  %1690 = vtanh.f32 %v1374_v38 }
 0x30b   : > { %v1691_v60 = vpop.eup %1690 }
 0x30c   : > { %v1376_v61 = vmul.f32 %v1691_v60, %v1689_v26 }
 0x30e   : > { %1378 = vst [vmem:[#allocation2 + $0x2] sm:$0x3] %v1376_v61  ;;  %v1379_v62 = vpack.c.bf16 %v1376_v61, %v1376_v61 }
 0x310   : > { %1473 = vmatmul.mubr.bf16.vlgmr.msra.gmra.mxu1 %v1379_v62 }
 0x3d0   : > { %v1474_v2 = vpop.f32.mrf.mxu1 }
 0x3d1   : > { %v1475_v4 = vadd.f32 %v1474_v2, %v1433_v0 }
 0x3d2   : > { %v1476_v3 = vpop.f32.mrf.mxu1 }
 0x3d3   : > { %v1477_v32 = vadd.f32 %v1476_v3, %v1437_v1 }
 0x3d4   : > { %v1478_v5 = vpop.f32.mrf.mxu1 }
 0x3d5   : > { %v1483_v6 = vcombine.low %v1475_v4, %v1477_v32 }
 0x3d6   : > { %v1479_v7 = vpop.f32.mrf.mxu1 }
 0x3d7   : > { %1589 = vst.sshfl [vmem:[%s3005_s28] sm:$0x33 pattern:$0x76325410] %v1483_v6 }
 0x3d8   : > { %1705 = shalt.err (!%p1702_p7)
}
 0x3d9   : > { %s1706_s16 = scalar_lea.hbm %s2939_s29, 64  ;;  %s1710_s1 = scalar_lea.hbm %s2990_s12, 576 }
 0x3da   : > { %p1707_p8 = scmp.ne.s32.totalorder %s2939_s29, %s1706_s16  ;;  %p1711_p11 = scmp.lt.s32.totalorder %s2939_s29, %s2990_s12 }
 0x3db   : > { %p1712_p12 = scmp.lt.s32.totalorder %s1710_s1, %s1706_s16 }
 0x3dc   : > { %p1708_p9 = pnand %p1707_p8, %p1860_p5 }
 0x3dd   : > { %p1713_p13 = por %p1712_p12, %p1711_p11 }
 0x3de   : > { %p1709_p10 = pneg %p1708_p9 }
 0x3e0   : > { %p1714_p0 = pnand %p1713_p13, %p1709_p10 }
 0x3e2   : > { %1717 = shalt.err (!%p1714_p0)
}
 0x3e3   : > { %1619 = dma.vmem_to_hbm [thread:$0]  (%p1860_p5), %s1509_s2, 64, %s2939_s29, %s1494_s17  }
 0x3e4 PF: > { %p1625_p1 = scmp.ge.s32.totalorder %s1752_s24, 2  ;;  %s1520_s28 = sand.u32 1, %s1740_s21  }
 0x3e5   : > { %s1521_s15 = scalar_lea.sflag [#allocation5], %s1520_s28 }
 0x3e6   : > { %p1622_p2 = pnand %p1625_p1, %p1864_p6 }
 0x3e8   : > { %p1623_p3 = pneg %p1622_p2 }
 0x3ea   : > { %1735 = dma.done.wait (%p1623_p3), %s1521_s15, 64  }
 0x3eb   : > { %1737 = vsyncadd (%p1623_p3), %s1521_s15, 4294967232  ;;  %s3007_s24 = sld [smem:[#allocation8_spill]]  ;;  %s3010_s21 = smov %s1744_s22 }
 0x3ec   : > { %s3008_s23 = sld [smem:[#allocation7_spill]] }
 0x3ed   : > { %s3009_s25 = sld [smem:[#allocation9_spill]] }
 0x3f1   : > { %p22_p4 = scmp.ge.s32.totalorder %s3007_s24, 11  }
 0x3f2   : > { %s3011_s22 = smov %s3008_s23 }
 0x3f3   : > { %s3012_s23 = smov %s3009_s25  ;;  %24 = sbr.rel (!%p22_p4) target bundleno = 6 (0x6), region = 112 }
 0x3f8   :  { %1526 = vsyncpa [#allocation5], 1 }
 0x3f9   :  { %1528 = vsyncpa [#allocation5 + $0x1], 1 }

</bundles_post_ra>
